<compile_context>
chip_gen: v6e
topology: v6e:2x2x1
jax: 0.10.0
libtpu: 0.0.40
codegen_flags: <defaults>
</compile_context>

<pallas_src>
import numpy as np
import jax
import jax.numpy as jnp
from jax.experimental import pallas as pl
from jax.experimental.pallas import tpu as pltpu

LANE = 128      # padded lane width of every activation slab (W*C <= 128 here)
ROWS = 16       # padded sublane height of every activation slab (max H)
K = 3           # conv kernel size
N_LAYERS = 6

# name, kind, Hi (= Wi), Cin, Cout    (spatial size halves / doubles, stride 2)
_LAYERS = (
    ("enc0", "conv",  16,  3, 16),
    ("enc1", "conv",   8, 16, 32),
    ("enc2", "conv",   4, 32, 64),
    ("dec0", "tconv",  2, 64, 32),
    ("dec1", "tconv",  4, 32, 16),
    ("dec2", "tconv",  8, 16,  3),
)


# ----------------------------------------------------------------------------
# Pallas kernel: whole 6-layer forward for one batch element, VMEM resident
# ----------------------------------------------------------------------------
def _ae_kernel(x_ref, s_ref, w_ref, b_ref, o_ref):
    h = x_ref[0]                                            # (ROWS, LANE) f32
    for l in range(N_LAYERS):
        acc = b_ref[l]                                      # (1, LANE), broadcasts
        for kh in range(K):
            # H-gather + H zero-padding via a tiny 0/1 row-selector matmul,
            # then the fused (W-gather x channel-mix) weight matmul.
            g = jnp.dot(s_ref[l, kh], h, preferred_element_type=jnp.float32)
            acc = acc + jnp.dot(g, w_ref[l, kh],
                                preferred_element_type=jnp.float32)
        h = jnp.maximum(acc, 0.0) if l < N_LAYERS - 1 else jax.nn.sigmoid(acc)
    o_ref[0] = h.astype(o_ref.dtype)


def autoencoder_forward(packed, x):
    """x: NCHW float32 -> NCHW float32, matching the PyTorch module."""
    n, c, hh, ww = x.shape
    # One-time boundary conversion: NCHW -> (N, H, W*C) row slabs, 128 lanes.
    x_rows = jnp.transpose(x, (0, 2, 3, 1)).reshape(n, hh, ww * c)
    x_p = jnp.zeros((n, ROWS, LANE), jnp.float32).at[:, :hh, :ww * c].set(x_rows)

    out = pl.pallas_call(
        _ae_kernel,
        grid=(n,),
        in_specs=[
            pl.BlockSpec((1, ROWS, LANE), lambda b: (b, 0, 0)),          # x
            pl.BlockSpec((N_LAYERS, K, ROWS, ROWS), lambda b: (0, 0, 0, 0)),  # S
            pl.BlockSpec((N_LAYERS, K, LANE, LANE), lambda b: (0, 0, 0, 0)),  # B
            pl.BlockSpec((N_LAYERS, 1, LANE), lambda b: (0, 0, 0)),      # bias
        ],
        out_specs=pl.BlockSpec((1, ROWS, LANE), lambda b: (b, 0, 0)),
        out_shape=jax.ShapeDtypeStruct((n, ROWS, LANE), jnp.float32),
        compiler_params=pltpu.CompilerParams(
            dimension_semantics=("parallel",),
            vmem_limit_bytes=32 * 1024 * 1024),
    )(x_p, packed["S"], packed["B"], packed["b"])

    # Boundary conversion back to NCHW (final layer has 3 real channels).
    y = out[:, :hh, :ww * 3].reshape(n, hh, ww, 3)
    return jnp.transpose(y, (0, 3, 1, 2))


# ----------------------------------------------------------------------------
# One-time (init) packing: row selectors S, fused W/channel matrices B, biases
# ----------------------------------------------------------------------------
def pack_params(params):
    S = np.zeros((N_LAYERS, K, ROWS, ROWS), np.float32)
    B = np.zeros((N_LAYERS, K, LANE, LANE), np.float32)
    bias = np.zeros((N_LAYERS, 1, LANE), np.float32)
    for l, (name, kind, hi, cin, cout) in enumerate(_LAYERS):
        wi = hi
        w = np.asarray(params[name + "_w"], np.float32)
        b = np.asarray(params[name + "_b"], np.float32)
        if kind == "conv":                       # Conv2d(k=3, stride=2, pad=1)
            ho = wo = hi // 2
            for kh in range(K):
                for i in range(ho):              # output row i <- input row 2i+kh-1
                    r = 2 * i + kh - 1
                    if 0 <= r < hi:
                        S[l, kh, i, r] = 1.0
                for kw in range(K):
                    tap = w[:, :, kh, kw].T      # (Cout,Cin,kh,kw) -> (cin, cout)
                    for j in range(wo):
                        ws = 2 * j + kw - 1
                        if 0 <= ws < wi:
                            B[l, kh, ws * cin:(ws + 1) * cin,
                                     j * cout:(j + 1) * cout] += tap
        else:                                    # ConvTranspose2d(k=3,s=2,p=1,op=1)
            ho = wo = hi * 2
            for kh in range(K):
                for io in range(ho):             # output row io <- input row (io+1-kh)/2
                    ih, rem = divmod(io + 1 - kh, 2)
                    if rem == 0 and 0 <= ih < hi:
                        S[l, kh, io, ih] = 1.0
                for kw in range(K):
                    tap = w[:, :, kh, kw]        # (Cin,Cout,kh,kw) -> (cin, cout)
                    for jo in range(wo):
                        iw, rem = divmod(jo + 1 - kw, 2)
                        if rem == 0 and 0 <= iw < wi:
                            B[l, kh, iw * cin:(iw + 1) * cin,
                                     jo * cout:(jo + 1) * cout] += tap
        for j in range(wo):                      # bias tiled along the W*C lanes
            bias[l, 0, j * cout:(j + 1) * cout] = b
    return {"S": jnp.asarray(S), "B": jnp.asarray(B), "b": jnp.asarray(bias)}


def init_params(key):
    """Deterministic synthetic parameters with the module's shapes."""
    shapes = [
        ("enc0_w", (16, 3, 3, 3)), ("enc0_b", (16,)),
        ("enc1_w", (32, 16, 3, 3)), ("enc1_b", (32,)),
        ("enc2_w", (64, 32, 3, 3)), ("enc2_b", (64,)),
        # ConvTranspose2d weights are (C_in, C_out, kH, kW) in PyTorch
        ("dec0_w", (64, 32, 3, 3)), ("dec0_b", (32,)),
        ("dec1_w", (32, 16, 3, 3)), ("dec1_b", (16,)),
        ("dec2_w", (16, 3, 3, 3)), ("dec2_b", (3,)),
    ]
    params = {}
    for i, (name, shp) in enumerate(shapes):
        k = jax.random.fold_in(key, i)
        params[name] = jax.random.normal(k, shp, jnp.float32) * 0.1
    return params


# ----------------------------------------------------------------------------
# Pure-lax reference (independent conv execution path) for a sanity check
# ----------------------------------------------------------------------------
def reference_forward(params, x):
    dn = ("NCHW", "OIHW", "NCHW")

    def conv(x, w, b, stride, pad):
        y = jax.lax.conv_general_dilated(
            x, w, (stride, stride), ((pad, pad), (pad, pad)),
            dimension_numbers=dn)
        return y + b[None, :, None, None]

    def tconv(x, w, b, stride, pad, op):
        k = w.shape[2]
        w_conv = jnp.flip(w, axis=(2, 3)).transpose(1, 0, 2, 3)
        lo, hi = k - 1 - pad, k - 1 - pad + op
        y = jax.lax.conv_general_dilated(
            x, w_conv, (1, 1), ((lo, hi), (lo, hi)),
            lhs_dilation=(stride, stride), dimension_numbers=dn)
        return y + b[None, :, None, None]

    h = jax.nn.relu(conv(x, params["enc0_w"], params["enc0_b"], 2, 1))
    h = jax.nn.relu(conv(h, params["enc1_w"], params["enc1_b"], 2, 1))
    h = jax.nn.relu(conv(h, params["enc2_w"], params["enc2_b"], 2, 1))
    h = jax.nn.relu(tconv(h, params["dec0_w"], params["dec0_b"], 2, 1, 1))
    h = jax.nn.relu(tconv(h, params["dec1_w"], params["dec1_b"], 2, 1, 1))
    h = jax.nn.sigmoid(tconv(h, params["dec2_w"], params["dec2_b"], 2, 1, 1))
    return h


if __name__ == "__main__":
    key = jax.random.PRNGKey(0)
    params = init_params(jax.random.fold_in(key, 100))
    x = jax.random.normal(jax.random.fold_in(key, 200), (2, 3, 16, 16),
                          jnp.float32)

    packed = pack_params(params)            # one-time init cost
    fwd = jax.jit(autoencoder_forward)
    y = jax.block_until_ready(fwd(packed, x))
    assert y.shape == (2, 3, 16, 16), y.shape

    y_ref = jax.block_until_ready(jax.jit(reference_forward)(params, x))
    np.testing.assert_allclose(np.asarray(y), np.asarray(y_ref),
                               rtol=1e-3, atol=1e-3)

    print("KERNEL_OK")
</pallas_src>

<mosaic_0001>
module attributes {stable_mosaic.version = 11 : i64} {
  func.func @_ae_kernel(%arg0: i32, %arg1: memref<1x16x128xf32, #tpu.memory_space<vmem>>, %arg2: memref<6x3x16x16xf32, #tpu.memory_space<vmem>>, %arg3: memref<6x3x128x128xf32, #tpu.memory_space<vmem>>, %arg4: memref<6x1x128xf32, #tpu.memory_space<vmem>>, %arg5: memref<1x16x128xf32, #tpu.memory_space<vmem>>) attributes {dimension_semantics = [#tpu.dimension_semantics<parallel>], iteration_bounds = array<i64: 2>, scalar_prefetch = 0 : i64, scratch_operands = 0 : i64, tpu.core_type = #tpu.core_type<tc>, window_params = [{transform_indices = @transform_0, window_bounds = array<i64: 1, 16, 128>}, {pipeline_mode = #tpu.pipeline_mode<synchronous>, transform_indices = @transform_1, window_bounds = array<i64: 6, 3, 16, 16>}, {pipeline_mode = #tpu.pipeline_mode<synchronous>, transform_indices = @transform_2, window_bounds = array<i64: 6, 3, 128, 128>}, {pipeline_mode = #tpu.pipeline_mode<synchronous>, transform_indices = @transform_3, window_bounds = array<i64: 6, 1, 128>}, {transform_indices = @transform_4, window_bounds = array<i64: 1, 16, 128>}]} {
    %c0 = arith.constant 0 : index
    %c0_0 = arith.constant 0 : index
    %c0_1 = arith.constant 0 : index
    %0 = vector.load %arg1[%c0, %c0_0, %c0_1] : memref<1x16x128xf32, #tpu.memory_space<vmem>>, vector<1x16x128xf32>
    %1 = vector.shape_cast %0 : vector<1x16x128xf32> to vector<16x128xf32>
    %c0_2 = arith.constant 0 : index
    %c0_3 = arith.constant 0 : index
    %c0_4 = arith.constant 0 : index
    %2 = vector.load %arg4[%c0_2, %c0_3, %c0_4] : memref<6x1x128xf32, #tpu.memory_space<vmem>>, vector<1x1x128xf32>
    %3 = vector.shape_cast %2 : vector<1x1x128xf32> to vector<1x128xf32>
    %c0_5 = arith.constant 0 : index
    %c0_6 = arith.constant 0 : index
    %c0_7 = arith.constant 0 : index
    %c0_8 = arith.constant 0 : index
    %4 = vector.load %arg2[%c0_5, %c0_6, %c0_7, %c0_8] : memref<6x3x16x16xf32, #tpu.memory_space<vmem>>, vector<1x1x16x16xf32>
    %5 = vector.shape_cast %4 : vector<1x1x16x16xf32> to vector<16x16xf32>
    %cst = arith.constant dense<0.000000e+00> : vector<16x128xf32>
    %6 = tpu.matmul %5, %1, %cst {dimension_numbers = #tpu.dot_dimension_numbers<[1], [0], [0], [1], [0, 0, 1, 1], [], []>} : vector<16x16xf32>, vector<16x128xf32>, vector<16x128xf32> -> vector<16x128xf32>
    %c0_9 = arith.constant 0 : index
    %c0_10 = arith.constant 0 : index
    %c0_11 = arith.constant 0 : index
    %c0_12 = arith.constant 0 : index
    %7 = vector.load %arg3[%c0_9, %c0_10, %c0_11, %c0_12] : memref<6x3x128x128xf32, #tpu.memory_space<vmem>>, vector<1x1x128x128xf32>
    %8 = vector.shape_cast %7 : vector<1x1x128x128xf32> to vector<128x128xf32>
    %cst_13 = arith.constant dense<0.000000e+00> : vector<16x128xf32>
    %9 = tpu.matmul %6, %8, %cst_13 {dimension_numbers = #tpu.dot_dimension_numbers<[1], [0], [0], [1], [0, 0, 1, 1], [], []>} : vector<16x128xf32>, vector<128x128xf32>, vector<16x128xf32> -> vector<16x128xf32>
    %10 = vector.broadcast %3 : vector<1x128xf32> to vector<16x128xf32>
    %11 = arith.addf %10, %9 : vector<16x128xf32>
    %c0_14 = arith.constant 0 : index
    %c1 = arith.constant 1 : index
    %c0_15 = arith.constant 0 : index
    %c0_16 = arith.constant 0 : index
    %12 = vector.load %arg2[%c0_14, %c1, %c0_15, %c0_16] : memref<6x3x16x16xf32, #tpu.memory_space<vmem>>, vector<1x1x16x16xf32>
    %13 = vector.shape_cast %12 : vector<1x1x16x16xf32> to vector<16x16xf32>
    %cst_17 = arith.constant dense<0.000000e+00> : vector<16x128xf32>
    %14 = tpu.matmul %13, %1, %cst_17 {dimension_numbers = #tpu.dot_dimension_numbers<[1], [0], [0], [1], [0, 0, 1, 1], [], []>} : vector<16x16xf32>, vector<16x128xf32>, vector<16x128xf32> -> vector<16x128xf32>
    %c0_18 = arith.constant 0 : index
    %c1_19 = arith.constant 1 : index
    %c0_20 = arith.constant 0 : index
    %c0_21 = arith.constant 0 : index
    %15 = vector.load %arg3[%c0_18, %c1_19, %c0_20, %c0_21] : memref<6x3x128x128xf32, #tpu.memory_space<vmem>>, vector<1x1x128x128xf32>
    %16 = vector.shape_cast %15 : vector<1x1x128x128xf32> to vector<128x128xf32>
    %cst_22 = arith.constant dense<0.000000e+00> : vector<16x128xf32>
    %17 = tpu.matmul %14, %16, %cst_22 {dimension_numbers = #tpu.dot_dimension_numbers<[1], [0], [0], [1], [0, 0, 1, 1], [], []>} : vector<16x128xf32>, vector<128x128xf32>, vector<16x128xf32> -> vector<16x128xf32>
    %18 = arith.addf %11, %17 : vector<16x128xf32>
    %c0_23 = arith.constant 0 : index
    %c2 = arith.constant 2 : index
    %c0_24 = arith.constant 0 : index
    %c0_25 = arith.constant 0 : index
    %19 = vector.load %arg2[%c0_23, %c2, %c0_24, %c0_25] : memref<6x3x16x16xf32, #tpu.memory_space<vmem>>, vector<1x1x16x16xf32>
    %20 = vector.shape_cast %19 : vector<1x1x16x16xf32> to vector<16x16xf32>
    %cst_26 = arith.constant dense<0.000000e+00> : vector<16x128xf32>
    %21 = tpu.matmul %20, %1, %cst_26 {dimension_numbers = #tpu.dot_dimension_numbers<[1], [0], [0], [1], [0, 0, 1, 1], [], []>} : vector<16x16xf32>, vector<16x128xf32>, vector<16x128xf32> -> vector<16x128xf32>
    %c0_27 = arith.constant 0 : index
    %c2_28 = arith.constant 2 : index
    %c0_29 = arith.constant 0 : index
    %c0_30 = arith.constant 0 : index
    %22 = vector.load %arg3[%c0_27, %c2_28, %c0_29, %c0_30] : memref<6x3x128x128xf32, #tpu.memory_space<vmem>>, vector<1x1x128x128xf32>
    %23 = vector.shape_cast %22 : vector<1x1x128x128xf32> to vector<128x128xf32>
    %cst_31 = arith.constant dense<0.000000e+00> : vector<16x128xf32>
    %24 = tpu.matmul %21, %23, %cst_31 {dimension_numbers = #tpu.dot_dimension_numbers<[1], [0], [0], [1], [0, 0, 1, 1], [], []>} : vector<16x128xf32>, vector<128x128xf32>, vector<16x128xf32> -> vector<16x128xf32>
    %25 = arith.addf %18, %24 : vector<16x128xf32>
    %cst_32 = arith.constant 0.000000e+00 : f32
    %26 = vector.broadcast %cst_32 : f32 to vector<16x128xf32>
    %27 = arith.maximumf %25, %26 : vector<16x128xf32>
    %c1_33 = arith.constant 1 : index
    %c0_34 = arith.constant 0 : index
    %c0_35 = arith.constant 0 : index
    %28 = vector.load %arg4[%c1_33, %c0_34, %c0_35] : memref<6x1x128xf32, #tpu.memory_space<vmem>>, vector<1x1x128xf32>
    %29 = vector.shape_cast %28 : vector<1x1x128xf32> to vector<1x128xf32>
    %c1_36 = arith.constant 1 : index
    %c0_37 = arith.constant 0 : index
    %c0_38 = arith.constant 0 : index
    %c0_39 = arith.constant 0 : index
    %30 = vector.load %arg2[%c1_36, %c0_37, %c0_38, %c0_39] : memref<6x3x16x16xf32, #tpu.memory_space<vmem>>, vector<1x1x16x16xf32>
    %31 = vector.shape_cast %30 : vector<1x1x16x16xf32> to vector<16x16xf32>
    %cst_40 = arith.constant dense<0.000000e+00> : vector<16x128xf32>
    %32 = tpu.matmul %31, %27, %cst_40 {dimension_numbers = #tpu.dot_dimension_numbers<[1], [0], [0], [1], [0, 0, 1, 1], [], []>} : vector<16x16xf32>, vector<16x128xf32>, vector<16x128xf32> -> vector<16x128xf32>
    %c1_41 = arith.constant 1 : index
    %c0_42 = arith.constant 0 : index
    %c0_43 = arith.constant 0 : index
    %c0_44 = arith.constant 0 : index
    %33 = vector.load %arg3[%c1_41, %c0_42, %c0_43, %c0_44] : memref<6x3x128x128xf32, #tpu.memory_space<vmem>>, vector<1x1x128x128xf32>
    %34 = vector.shape_cast %33 : vector<1x1x128x128xf32> to vector<128x128xf32>
    %cst_45 = arith.constant dense<0.000000e+00> : vector<16x128xf32>
    %35 = tpu.matmul %32, %34, %cst_45 {dimension_numbers = #tpu.dot_dimension_numbers<[1], [0], [0], [1], [0, 0, 1, 1], [], []>} : vector<16x128xf32>, vector<128x128xf32>, vector<16x128xf32> -> vector<16x128xf32>
    %36 = vector.broadcast %29 : vector<1x128xf32> to vector<16x128xf32>
    %37 = arith.addf %36, %35 : vector<16x128xf32>
    %c1_46 = arith.constant 1 : index
    %c1_47 = arith.constant 1 : index
    %c0_48 = arith.constant 0 : index
    %c0_49 = arith.constant 0 : index
    %38 = vector.load %arg2[%c1_46, %c1_47, %c0_48, %c0_49] : memref<6x3x16x16xf32, #tpu.memory_space<vmem>>, vector<1x1x16x16xf32>
    %39 = vector.shape_cast %38 : vector<1x1x16x16xf32> to vector<16x16xf32>
    %cst_50 = arith.constant dense<0.000000e+00> : vector<16x128xf32>
    %40 = tpu.matmul %39, %27, %cst_50 {dimension_numbers = #tpu.dot_dimension_numbers<[1], [0], [0], [1], [0, 0, 1, 1], [], []>} : vector<16x16xf32>, vector<16x128xf32>, vector<16x128xf32> -> vector<16x128xf32>
    %c1_51 = arith.constant 1 : index
    %c1_52 = arith.constant 1 : index
    %c0_53 = arith.constant 0 : index
    %c0_54 = arith.constant 0 : index
    %41 = vector.load %arg3[%c1_51, %c1_52, %c0_53, %c0_54] : memref<6x3x128x128xf32, #tpu.memory_space<vmem>>, vector<1x1x128x128xf32>
    %42 = vector.shape_cast %41 : vector<1x1x128x128xf32> to vector<128x128xf32>
    %cst_55 = arith.constant dense<0.000000e+00> : vector<16x128xf32>
    %43 = tpu.matmul %40, %42, %cst_55 {dimension_numbers = #tpu.dot_dimension_numbers<[1], [0], [0], [1], [0, 0, 1, 1], [], []>} : vector<16x128xf32>, vector<128x128xf32>, vector<16x128xf32> -> vector<16x128xf32>
    %44 = arith.addf %37, %43 : vector<16x128xf32>
    %c1_56 = arith.constant 1 : index
    %c2_57 = arith.constant 2 : index
    %c0_58 = arith.constant 0 : index
    %c0_59 = arith.constant 0 : index
    %45 = vector.load %arg2[%c1_56, %c2_57, %c0_58, %c0_59] : memref<6x3x16x16xf32, #tpu.memory_space<vmem>>, vector<1x1x16x16xf32>
    %46 = vector.shape_cast %45 : vector<1x1x16x16xf32> to vector<16x16xf32>
    %cst_60 = arith.constant dense<0.000000e+00> : vector<16x128xf32>
    %47 = tpu.matmul %46, %27, %cst_60 {dimension_numbers = #tpu.dot_dimension_numbers<[1], [0], [0], [1], [0, 0, 1, 1], [], []>} : vector<16x16xf32>, vector<16x128xf32>, vector<16x128xf32> -> vector<16x128xf32>
    %c1_61 = arith.constant 1 : index
    %c2_62 = arith.constant 2 : index
    %c0_63 = arith.constant 0 : index
    %c0_64 = arith.constant 0 : index
    %48 = vector.load %arg3[%c1_61, %c2_62, %c0_63, %c0_64] : memref<6x3x128x128xf32, #tpu.memory_space<vmem>>, vector<1x1x128x128xf32>
    %49 = vector.shape_cast %48 : vector<1x1x128x128xf32> to vector<128x128xf32>
    %cst_65 = arith.constant dense<0.000000e+00> : vector<16x128xf32>
    %50 = tpu.matmul %47, %49, %cst_65 {dimension_numbers = #tpu.dot_dimension_numbers<[1], [0], [0], [1], [0, 0, 1, 1], [], []>} : vector<16x128xf32>, vector<128x128xf32>, vector<16x128xf32> -> vector<16x128xf32>
    %51 = arith.addf %44, %50 : vector<16x128xf32>
    %cst_66 = arith.constant 0.000000e+00 : f32
    %52 = vector.broadcast %cst_66 : f32 to vector<16x128xf32>
    %53 = arith.maximumf %51, %52 : vector<16x128xf32>
    %c2_67 = arith.constant 2 : index
    %c0_68 = arith.constant 0 : index
    %c0_69 = arith.constant 0 : index
    %54 = vector.load %arg4[%c2_67, %c0_68, %c0_69] : memref<6x1x128xf32, #tpu.memory_space<vmem>>, vector<1x1x128xf32>
    %55 = vector.shape_cast %54 : vector<1x1x128xf32> to vector<1x128xf32>
    %c2_70 = arith.constant 2 : index
    %c0_71 = arith.constant 0 : index
    %c0_72 = arith.constant 0 : index
    %c0_73 = arith.constant 0 : index
    %56 = vector.load %arg2[%c2_70, %c0_71, %c0_72, %c0_73] : memref<6x3x16x16xf32, #tpu.memory_space<vmem>>, vector<1x1x16x16xf32>
    %57 = vector.shape_cast %56 : vector<1x1x16x16xf32> to vector<16x16xf32>
    %cst_74 = arith.constant dense<0.000000e+00> : vector<16x128xf32>
    %58 = tpu.matmul %57, %53, %cst_74 {dimension_numbers = #tpu.dot_dimension_numbers<[1], [0], [0], [1], [0, 0, 1, 1], [], []>} : vector<16x16xf32>, vector<16x128xf32>, vector<16x128xf32> -> vector<16x128xf32>
    %c2_75 = arith.constant 2 : index
    %c0_76 = arith.constant 0 : index
    %c0_77 = arith.constant 0 : index
    %c0_78 = arith.constant 0 : index
    %59 = vector.load %arg3[%c2_75, %c0_76, %c0_77, %c0_78] : memref<6x3x128x128xf32, #tpu.memory_space<vmem>>, vector<1x1x128x128xf32>
    %60 = vector.shape_cast %59 : vector<1x1x128x128xf32> to vector<128x128xf32>
    %cst_79 = arith.constant dense<0.000000e+00> : vector<16x128xf32>
    %61 = tpu.matmul %58, %60, %cst_79 {dimension_numbers = #tpu.dot_dimension_numbers<[1], [0], [0], [1], [0, 0, 1, 1], [], []>} : vector<16x128xf32>, vector<128x128xf32>, vector<16x128xf32> -> vector<16x128xf32>
    %62 = vector.broadcast %55 : vector<1x128xf32> to vector<16x128xf32>
    %63 = arith.addf %62, %61 : vector<16x128xf32>
    %c2_80 = arith.constant 2 : index
    %c1_81 = arith.constant 1 : index
    %c0_82 = arith.constant 0 : index
    %c0_83 = arith.constant 0 : index
    %64 = vector.load %arg2[%c2_80, %c1_81, %c0_82, %c0_83] : memref<6x3x16x16xf32, #tpu.memory_space<vmem>>, vector<1x1x16x16xf32>
    %65 = vector.shape_cast %64 : vector<1x1x16x16xf32> to vector<16x16xf32>
    %cst_84 = arith.constant dense<0.000000e+00> : vector<16x128xf32>
    %66 = tpu.matmul %65, %53, %cst_84 {dimension_numbers = #tpu.dot_dimension_numbers<[1], [0], [0], [1], [0, 0, 1, 1], [], []>} : vector<16x16xf32>, vector<16x128xf32>, vector<16x128xf32> -> vector<16x128xf32>
    %c2_85 = arith.constant 2 : index
    %c1_86 = arith.constant 1 : index
    %c0_87 = arith.constant 0 : index
    %c0_88 = arith.constant 0 : index
    %67 = vector.load %arg3[%c2_85, %c1_86, %c0_87, %c0_88] : memref<6x3x128x128xf32, #tpu.memory_space<vmem>>, vector<1x1x128x128xf32>
    %68 = vector.shape_cast %67 : vector<1x1x128x128xf32> to vector<128x128xf32>
    %cst_89 = arith.constant dense<0.000000e+00> : vector<16x128xf32>
    %69 = tpu.matmul %66, %68, %cst_89 {dimension_numbers = #tpu.dot_dimension_numbers<[1], [0], [0], [1], [0, 0, 1, 1], [], []>} : vector<16x128xf32>, vector<128x128xf32>, vector<16x128xf32> -> vector<16x128xf32>
    %70 = arith.addf %63, %69 : vector<16x128xf32>
    %c2_90 = arith.constant 2 : index
    %c2_91 = arith.constant 2 : index
    %c0_92 = arith.constant 0 : index
    %c0_93 = arith.constant 0 : index
    %71 = vector.load %arg2[%c2_90, %c2_91, %c0_92, %c0_93] : memref<6x3x16x16xf32, #tpu.memory_space<vmem>>, vector<1x1x16x16xf32>
    %72 = vector.shape_cast %71 : vector<1x1x16x16xf32> to vector<16x16xf32>
    %cst_94 = arith.constant dense<0.000000e+00> : vector<16x128xf32>
    %73 = tpu.matmul %72, %53, %cst_94 {dimension_numbers = #tpu.dot_dimension_numbers<[1], [0], [0], [1], [0, 0, 1, 1], [], []>} : vector<16x16xf32>, vector<16x128xf32>, vector<16x128xf32> -> vector<16x128xf32>
    %c2_95 = arith.constant 2 : index
    %c2_96 = arith.constant 2 : index
    %c0_97 = arith.constant 0 : index
    %c0_98 = arith.constant 0 : index
    %74 = vector.load %arg3[%c2_95, %c2_96, %c0_97, %c0_98] : memref<6x3x128x128xf32, #tpu.memory_space<vmem>>, vector<1x1x128x128xf32>
    %75 = vector.shape_cast %74 : vector<1x1x128x128xf32> to vector<128x128xf32>
    %cst_99 = arith.constant dense<0.000000e+00> : vector<16x128xf32>
    %76 = tpu.matmul %73, %75, %cst_99 {dimension_numbers = #tpu.dot_dimension_numbers<[1], [0], [0], [1], [0, 0, 1, 1], [], []>} : vector<16x128xf32>, vector<128x128xf32>, vector<16x128xf32> -> vector<16x128xf32>
    %77 = arith.addf %70, %76 : vector<16x128xf32>
    %cst_100 = arith.constant 0.000000e+00 : f32
    %78 = vector.broadcast %cst_100 : f32 to vector<16x128xf32>
    %79 = arith.maximumf %77, %78 : vector<16x128xf32>
    %c3 = arith.constant 3 : index
    %c0_101 = arith.constant 0 : index
    %c0_102 = arith.constant 0 : index
    %80 = vector.load %arg4[%c3, %c0_101, %c0_102] : memref<6x1x128xf32, #tpu.memory_space<vmem>>, vector<1x1x128xf32>
    %81 = vector.shape_cast %80 : vector<1x1x128xf32> to vector<1x128xf32>
    %c3_103 = arith.constant 3 : index
    %c0_104 = arith.constant 0 : index
    %c0_105 = arith.constant 0 : index
    %c0_106 = arith.constant 0 : index
    %82 = vector.load %arg2[%c3_103, %c0_104, %c0_105, %c0_106] : memref<6x3x16x16xf32, #tpu.memory_space<vmem>>, vector<1x1x16x16xf32>
    %83 = vector.shape_cast %82 : vector<1x1x16x16xf32> to vector<16x16xf32>
    %cst_107 = arith.constant dense<0.000000e+00> : vector<16x128xf32>
    %84 = tpu.matmul %83, %79, %cst_107 {dimension_numbers = #tpu.dot_dimension_numbers<[1], [0], [0], [1], [0, 0, 1, 1], [], []>} : vector<16x16xf32>, vector<16x128xf32>, vector<16x128xf32> -> vector<16x128xf32>
    %c3_108 = arith.constant 3 : index
    %c0_109 = arith.constant 0 : index
    %c0_110 = arith.constant 0 : index
    %c0_111 = arith.constant 0 : index
    %85 = vector.load %arg3[%c3_108, %c0_109, %c0_110, %c0_111] : memref<6x3x128x128xf32, #tpu.memory_space<vmem>>, vector<1x1x128x128xf32>
    %86 = vector.shape_cast %85 : vector<1x1x128x128xf32> to vector<128x128xf32>
    %cst_112 = arith.constant dense<0.000000e+00> : vector<16x128xf32>
    %87 = tpu.matmul %84, %86, %cst_112 {dimension_numbers = #tpu.dot_dimension_numbers<[1], [0], [0], [1], [0, 0, 1, 1], [], []>} : vector<16x128xf32>, vector<128x128xf32>, vector<16x128xf32> -> vector<16x128xf32>
    %88 = vector.broadcast %81 : vector<1x128xf32> to vector<16x128xf32>
    %89 = arith.addf %88, %87 : vector<16x128xf32>
    %c3_113 = arith.constant 3 : index
    %c1_114 = arith.constant 1 : index
    %c0_115 = arith.constant 0 : index
    %c0_116 = arith.constant 0 : index
    %90 = vector.load %arg2[%c3_113, %c1_114, %c0_115, %c0_116] : memref<6x3x16x16xf32, #tpu.memory_space<vmem>>, vector<1x1x16x16xf32>
    %91 = vector.shape_cast %90 : vector<1x1x16x16xf32> to vector<16x16xf32>
    %cst_117 = arith.constant dense<0.000000e+00> : vector<16x128xf32>
    %92 = tpu.matmul %91, %79, %cst_117 {dimension_numbers = #tpu.dot_dimension_numbers<[1], [0], [0], [1], [0, 0, 1, 1], [], []>} : vector<16x16xf32>, vector<16x128xf32>, vector<16x128xf32> -> vector<16x128xf32>
    %c3_118 = arith.constant 3 : index
    %c1_119 = arith.constant 1 : index
    %c0_120 = arith.constant 0 : index
    %c0_121 = arith.constant 0 : index
    %93 = vector.load %arg3[%c3_118, %c1_119, %c0_120, %c0_121] : memref<6x3x128x128xf32, #tpu.memory_space<vmem>>, vector<1x1x128x128xf32>
    %94 = vector.shape_cast %93 : vector<1x1x128x128xf32> to vector<128x128xf32>
    %cst_122 = arith.constant dense<0.000000e+00> : vector<16x128xf32>
    %95 = tpu.matmul %92, %94, %cst_122 {dimension_numbers = #tpu.dot_dimension_numbers<[1], [0], [0], [1], [0, 0, 1, 1], [], []>} : vector<16x128xf32>, vector<128x128xf32>, vector<16x128xf32> -> vector<16x128xf32>
    %96 = arith.addf %89, %95 : vector<16x128xf32>
    %c3_123 = arith.constant 3 : index
    %c2_124 = arith.constant 2 : index
    %c0_125 = arith.constant 0 : index
    %c0_126 = arith.constant 0 : index
    %97 = vector.load %arg2[%c3_123, %c2_124, %c0_125, %c0_126] : memref<6x3x16x16xf32, #tpu.memory_space<vmem>>, vector<1x1x16x16xf32>
    %98 = vector.shape_cast %97 : vector<1x1x16x16xf32> to vector<16x16xf32>
    %cst_127 = arith.constant dense<0.000000e+00> : vector<16x128xf32>
    %99 = tpu.matmul %98, %79, %cst_127 {dimension_numbers = #tpu.dot_dimension_numbers<[1], [0], [0], [1], [0, 0, 1, 1], [], []>} : vector<16x16xf32>, vector<16x128xf32>, vector<16x128xf32> -> vector<16x128xf32>
    %c3_128 = arith.constant 3 : index
    %c2_129 = arith.constant 2 : index
    %c0_130 = arith.constant 0 : index
    %c0_131 = arith.constant 0 : index
    %100 = vector.load %arg3[%c3_128, %c2_129, %c0_130, %c0_131] : memref<6x3x128x128xf32, #tpu.memory_space<vmem>>, vector<1x1x128x128xf32>
    %101 = vector.shape_cast %100 : vector<1x1x128x128xf32> to vector<128x128xf32>
    %cst_132 = arith.constant dense<0.000000e+00> : vector<16x128xf32>
    %102 = tpu.matmul %99, %101, %cst_132 {dimension_numbers = #tpu.dot_dimension_numbers<[1], [0], [0], [1], [0, 0, 1, 1], [], []>} : vector<16x128xf32>, vector<128x128xf32>, vector<16x128xf32> -> vector<16x128xf32>
    %103 = arith.addf %96, %102 : vector<16x128xf32>
    %cst_133 = arith.constant 0.000000e+00 : f32
    %104 = vector.broadcast %cst_133 : f32 to vector<16x128xf32>
    %105 = arith.maximumf %103, %104 : vector<16x128xf32>
    %c4 = arith.constant 4 : index
    %c0_134 = arith.constant 0 : index
    %c0_135 = arith.constant 0 : index
    %106 = vector.load %arg4[%c4, %c0_134, %c0_135] : memref<6x1x128xf32, #tpu.memory_space<vmem>>, vector<1x1x128xf32>
    %107 = vector.shape_cast %106 : vector<1x1x128xf32> to vector<1x128xf32>
    %c4_136 = arith.constant 4 : index
    %c0_137 = arith.constant 0 : index
    %c0_138 = arith.constant 0 : index
    %c0_139 = arith.constant 0 : index
    %108 = vector.load %arg2[%c4_136, %c0_137, %c0_138, %c0_139] : memref<6x3x16x16xf32, #tpu.memory_space<vmem>>, vector<1x1x16x16xf32>
    %109 = vector.shape_cast %108 : vector<1x1x16x16xf32> to vector<16x16xf32>
    %cst_140 = arith.constant dense<0.000000e+00> : vector<16x128xf32>
    %110 = tpu.matmul %109, %105, %cst_140 {dimension_numbers = #tpu.dot_dimension_numbers<[1], [0], [0], [1], [0, 0, 1, 1], [], []>} : vector<16x16xf32>, vector<16x128xf32>, vector<16x128xf32> -> vector<16x128xf32>
    %c4_141 = arith.constant 4 : index
    %c0_142 = arith.constant 0 : index
    %c0_143 = arith.constant 0 : index
    %c0_144 = arith.constant 0 : index
    %111 = vector.load %arg3[%c4_141, %c0_142, %c0_143, %c0_144] : memref<6x3x128x128xf32, #tpu.memory_space<vmem>>, vector<1x1x128x128xf32>
    %112 = vector.shape_cast %111 : vector<1x1x128x128xf32> to vector<128x128xf32>
    %cst_145 = arith.constant dense<0.000000e+00> : vector<16x128xf32>
    %113 = tpu.matmul %110, %112, %cst_145 {dimension_numbers = #tpu.dot_dimension_numbers<[1], [0], [0], [1], [0, 0, 1, 1], [], []>} : vector<16x128xf32>, vector<128x128xf32>, vector<16x128xf32> -> vector<16x128xf32>
    %114 = vector.broadcast %107 : vector<1x128xf32> to vector<16x128xf32>
    %115 = arith.addf %114, %113 : vector<16x128xf32>
    %c4_146 = arith.constant 4 : index
    %c1_147 = arith.constant 1 : index
    %c0_148 = arith.constant 0 : index
    %c0_149 = arith.constant 0 : index
    %116 = vector.load %arg2[%c4_146, %c1_147, %c0_148, %c0_149] : memref<6x3x16x16xf32, #tpu.memory_space<vmem>>, vector<1x1x16x16xf32>
    %117 = vector.shape_cast %116 : vector<1x1x16x16xf32> to vector<16x16xf32>
    %cst_150 = arith.constant dense<0.000000e+00> : vector<16x128xf32>
    %118 = tpu.matmul %117, %105, %cst_150 {dimension_numbers = #tpu.dot_dimension_numbers<[1], [0], [0], [1], [0, 0, 1, 1], [], []>} : vector<16x16xf32>, vector<16x128xf32>, vector<16x128xf32> -> vector<16x128xf32>
    %c4_151 = arith.constant 4 : index
    %c1_152 = arith.constant 1 : index
    %c0_153 = arith.constant 0 : index
    %c0_154 = arith.constant 0 : index
    %119 = vector.load %arg3[%c4_151, %c1_152, %c0_153, %c0_154] : memref<6x3x128x128xf32, #tpu.memory_space<vmem>>, vector<1x1x128x128xf32>
    %120 = vector.shape_cast %119 : vector<1x1x128x128xf32> to vector<128x128xf32>
    %cst_155 = arith.constant dense<0.000000e+00> : vector<16x128xf32>
    %121 = tpu.matmul %118, %120, %cst_155 {dimension_numbers = #tpu.dot_dimension_numbers<[1], [0], [0], [1], [0, 0, 1, 1], [], []>} : vector<16x128xf32>, vector<128x128xf32>, vector<16x128xf32> -> vector<16x128xf32>
    %122 = arith.addf %115, %121 : vector<16x128xf32>
    %c4_156 = arith.constant 4 : index
    %c2_157 = arith.constant 2 : index
    %c0_158 = arith.constant 0 : index
    %c0_159 = arith.constant 0 : index
    %123 = vector.load %arg2[%c4_156, %c2_157, %c0_158, %c0_159] : memref<6x3x16x16xf32, #tpu.memory_space<vmem>>, vector<1x1x16x16xf32>
    %124 = vector.shape_cast %123 : vector<1x1x16x16xf32> to vector<16x16xf32>
    %cst_160 = arith.constant dense<0.000000e+00> : vector<16x128xf32>
    %125 = tpu.matmul %124, %105, %cst_160 {dimension_numbers = #tpu.dot_dimension_numbers<[1], [0], [0], [1], [0, 0, 1, 1], [], []>} : vector<16x16xf32>, vector<16x128xf32>, vector<16x128xf32> -> vector<16x128xf32>
    %c4_161 = arith.constant 4 : index
    %c2_162 = arith.constant 2 : index
    %c0_163 = arith.constant 0 : index
    %c0_164 = arith.constant 0 : index
    %126 = vector.load %arg3[%c4_161, %c2_162, %c0_163, %c0_164] : memref<6x3x128x128xf32, #tpu.memory_space<vmem>>, vector<1x1x128x128xf32>
    %127 = vector.shape_cast %126 : vector<1x1x128x128xf32> to vector<128x128xf32>
    %cst_165 = arith.constant dense<0.000000e+00> : vector<16x128xf32>
    %128 = tpu.matmul %125, %127, %cst_165 {dimension_numbers = #tpu.dot_dimension_numbers<[1], [0], [0], [1], [0, 0, 1, 1], [], []>} : vector<16x128xf32>, vector<128x128xf32>, vector<16x128xf32> -> vector<16x128xf32>
    %129 = arith.addf %122, %128 : vector<16x128xf32>
    %cst_166 = arith.constant 0.000000e+00 : f32
    %130 = vector.broadcast %cst_166 : f32 to vector<16x128xf32>
    %131 = arith.maximumf %129, %130 : vector<16x128xf32>
    %c5 = arith.constant 5 : index
    %c0_167 = arith.constant 0 : index
    %c0_168 = arith.constant 0 : index
    %132 = vector.load %arg4[%c5, %c0_167, %c0_168] : memref<6x1x128xf32, #tpu.memory_space<vmem>>, vector<1x1x128xf32>
    %133 = vector.shape_cast %132 : vector<1x1x128xf32> to vector<1x128xf32>
    %c5_169 = arith.constant 5 : index
    %c0_170 = arith.constant 0 : index
    %c0_171 = arith.constant 0 : index
    %c0_172 = arith.constant 0 : index
    %134 = vector.load %arg2[%c5_169, %c0_170, %c0_171, %c0_172] : memref<6x3x16x16xf32, #tpu.memory_space<vmem>>, vector<1x1x16x16xf32>
    %135 = vector.shape_cast %134 : vector<1x1x16x16xf32> to vector<16x16xf32>
    %cst_173 = arith.constant dense<0.000000e+00> : vector<16x128xf32>
    %136 = tpu.matmul %135, %131, %cst_173 {dimension_numbers = #tpu.dot_dimension_numbers<[1], [0], [0], [1], [0, 0, 1, 1], [], []>} : vector<16x16xf32>, vector<16x128xf32>, vector<16x128xf32> -> vector<16x128xf32>
    %c5_174 = arith.constant 5 : index
    %c0_175 = arith.constant 0 : index
    %c0_176 = arith.constant 0 : index
    %c0_177 = arith.constant 0 : index
    %137 = vector.load %arg3[%c5_174, %c0_175, %c0_176, %c0_177] : memref<6x3x128x128xf32, #tpu.memory_space<vmem>>, vector<1x1x128x128xf32>
    %138 = vector.shape_cast %137 : vector<1x1x128x128xf32> to vector<128x128xf32>
    %cst_178 = arith.constant dense<0.000000e+00> : vector<16x128xf32>
    %139 = tpu.matmul %136, %138, %cst_178 {dimension_numbers = #tpu.dot_dimension_numbers<[1], [0], [0], [1], [0, 0, 1, 1], [], []>} : vector<16x128xf32>, vector<128x128xf32>, vector<16x128xf32> -> vector<16x128xf32>
    %140 = vector.broadcast %133 : vector<1x128xf32> to vector<16x128xf32>
    %141 = arith.addf %140, %139 : vector<16x128xf32>
    %c5_179 = arith.constant 5 : index
    %c1_180 = arith.constant 1 : index
    %c0_181 = arith.constant 0 : index
    %c0_182 = arith.constant 0 : index
    %142 = vector.load %arg2[%c5_179, %c1_180, %c0_181, %c0_182] : memref<6x3x16x16xf32, #tpu.memory_space<vmem>>, vector<1x1x16x16xf32>
    %143 = vector.shape_cast %142 : vector<1x1x16x16xf32> to vector<16x16xf32>
    %cst_183 = arith.constant dense<0.000000e+00> : vector<16x128xf32>
    %144 = tpu.matmul %143, %131, %cst_183 {dimension_numbers = #tpu.dot_dimension_numbers<[1], [0], [0], [1], [0, 0, 1, 1], [], []>} : vector<16x16xf32>, vector<16x128xf32>, vector<16x128xf32> -> vector<16x128xf32>
    %c5_184 = arith.constant 5 : index
    %c1_185 = arith.constant 1 : index
    %c0_186 = arith.constant 0 : index
    %c0_187 = arith.constant 0 : index
    %145 = vector.load %arg3[%c5_184, %c1_185, %c0_186, %c0_187] : memref<6x3x128x128xf32, #tpu.memory_space<vmem>>, vector<1x1x128x128xf32>
    %146 = vector.shape_cast %145 : vector<1x1x128x128xf32> to vector<128x128xf32>
    %cst_188 = arith.constant dense<0.000000e+00> : vector<16x128xf32>
    %147 = tpu.matmul %144, %146, %cst_188 {dimension_numbers = #tpu.dot_dimension_numbers<[1], [0], [0], [1], [0, 0, 1, 1], [], []>} : vector<16x128xf32>, vector<128x128xf32>, vector<16x128xf32> -> vector<16x128xf32>
    %148 = arith.addf %141, %147 : vector<16x128xf32>
    %c5_189 = arith.constant 5 : index
    %c2_190 = arith.constant 2 : index
    %c0_191 = arith.constant 0 : index
    %c0_192 = arith.constant 0 : index
    %149 = vector.load %arg2[%c5_189, %c2_190, %c0_191, %c0_192] : memref<6x3x16x16xf32, #tpu.memory_space<vmem>>, vector<1x1x16x16xf32>
    %150 = vector.shape_cast %149 : vector<1x1x16x16xf32> to vector<16x16xf32>
    %cst_193 = arith.constant dense<0.000000e+00> : vector<16x128xf32>
    %151 = tpu.matmul %150, %131, %cst_193 {dimension_numbers = #tpu.dot_dimension_numbers<[1], [0], [0], [1], [0, 0, 1, 1], [], []>} : vector<16x16xf32>, vector<16x128xf32>, vector<16x128xf32> -> vector<16x128xf32>
    %c5_194 = arith.constant 5 : index
    %c2_195 = arith.constant 2 : index
    %c0_196 = arith.constant 0 : index
    %c0_197 = arith.constant 0 : index
    %152 = vector.load %arg3[%c5_194, %c2_195, %c0_196, %c0_197] : memref<6x3x128x128xf32, #tpu.memory_space<vmem>>, vector<1x1x128x128xf32>
    %153 = vector.shape_cast %152 : vector<1x1x128x128xf32> to vector<128x128xf32>
    %cst_198 = arith.constant dense<0.000000e+00> : vector<16x128xf32>
    %154 = tpu.matmul %151, %153, %cst_198 {dimension_numbers = #tpu.dot_dimension_numbers<[1], [0], [0], [1], [0, 0, 1, 1], [], []>} : vector<16x128xf32>, vector<128x128xf32>, vector<16x128xf32> -> vector<16x128xf32>
    %155 = arith.addf %148, %154 : vector<16x128xf32>
    %156 = arith.negf %155 : vector<16x128xf32>
    %157 = math.exp %156 : vector<16x128xf32>
    %cst_199 = arith.constant 1.000000e+00 : f32
    %158 = vector.broadcast %cst_199 : f32 to vector<16x128xf32>
    %159 = arith.addf %158, %157 : vector<16x128xf32>
    %160 = arith.divf %158, %159 : vector<16x128xf32>
    %c0_200 = arith.constant 0 : index
    %c0_201 = arith.constant 0 : index
    %c0_202 = arith.constant 0 : index
    %161 = vector.load %arg5[%c0_200, %c0_201, %c0_202] : memref<1x16x128xf32, #tpu.memory_space<vmem>>, vector<1x16x128xf32>
    %162 = vector.shape_cast %161 : vector<1x16x128xf32> to vector<16x128xf32>
    %163 = vector.shape_cast %160 : vector<16x128xf32> to vector<1x16x128xf32>
    tpu.vector_store %arg5[%c0_200, %c0_201, %c0_202], %163 {strides = array<i32>} : memref<1x16x128xf32, #tpu.memory_space<vmem>>, vector<1x16x128xf32>,
    return
  }
  func.func @transform_0(%arg0: i32) -> (i32, i32, i32) {
    %c0_i32 = arith.constant 0 : i32
    %c0_i32_0 = arith.constant 0 : i32
    %c0_i32_1 = arith.constant 0 : i32
    return %arg0, %c0_i32, %c0_i32_0 : i32, i32, i32
  }
  func.func @transform_1(%arg0: i32) -> (i32, i32, i32, i32) {
    %c0_i32 = arith.constant 0 : i32
    %c0_i32_0 = arith.constant 0 : i32
    %c0_i32_1 = arith.constant 0 : i32
    %c0_i32_2 = arith.constant 0 : i32
    %c0_i32_3 = arith.constant 0 : i32
    return %c0_i32, %c0_i32_0, %c0_i32_1, %c0_i32_2 : i32, i32, i32, i32
  }
  func.func @transform_2(%arg0: i32) -> (i32, i32, i32, i32) {
    %c0_i32 = arith.constant 0 : i32
    %c0_i32_0 = arith.constant 0 : i32
    %c0_i32_1 = arith.constant 0 : i32
    %c0_i32_2 = arith.constant 0 : i32
    %c0_i32_3 = arith.constant 0 : i32
    return %c0_i32, %c0_i32_0, %c0_i32_1, %c0_i32_2 : i32, i32, i32, i32
  }
  func.func @transform_3(%arg0: i32) -> (i32, i32, i32) {
    %c0_i32 = arith.constant 0 : i32
    %c0_i32_0 = arith.constant 0 : i32
    %c0_i32_1 = arith.constant 0 : i32
    %c0_i32_2 = arith.constant 0 : i32
    return %c0_i32, %c0_i32_0, %c0_i32_1 : i32, i32, i32
  }
  func.func @transform_4(%arg0: i32) -> (i32, i32, i32) {
    %c0_i32 = arith.constant 0 : i32
    %c0_i32_0 = arith.constant 0 : i32
    %c0_i32_1 = arith.constant 0 : i32
    return %arg0, %c0_i32, %c0_i32_0 : i32, i32, i32
  }
}

</mosaic_0001>

<bundles_post_ra>
// kernel: autoencoder_forward.1
= control target key start
LH: loop header
LB: loop body
LE: loop exit
PB: predicated region body
PF: predicated region fallthrough
CT: control target
= control target key end

     0   :  { %9 = vsyncpa [#allocation3], 0  ;;  %s5219_s0 = inlined_call_operand.vmem [shape: f32[2,16,128], index: 0, kind: input, shape index: {}]   ;;  %s5220_s1 = inlined_call_operand.hbm [shape: f32[6,3,16,16], index: 1, kind: input, shape index: {}]   ;;  %s5221_s2 = inlined_call_operand.hbm [shape: f32[6,3,128,128], index: 2, kind: input, shape index: {}]   ;;  %s5222_s3 = inlined_call_operand.hbm [shape: f32[6,1,128], index: 3, kind: input, shape index: {}]   ;;  %s5223_s4 = inlined_call_operand.vmem [shape: f32[2,16,128], index: 4, kind: output, shape index: {}]  }
   0x1   :  { %10 = vsyncpa [#allocation5], 0  ;;  %s4996_s15 = smov 0  }
   0x2 LB: > { %s5002_s16 = sadd.s32 4294967295, %s4962_s15   ;;  %p3606_p0 = scmp.ge.s32.totalorder %s4962_s15, 1  ;;  %s4962_s15 = sphi %s4996_s15, %s16_s15  }
   0x3   : > { %p136_p1 = scmp.lt.s32.totalorder %s4962_s15, 3  ;;  %p4841_p2 = scmp.eq.s32.totalorder %s5002_s16, 0 }
   0x4   : > { %s4964_s18 = smov [#allocation4]   ;;  %s4965_s20 = smov [#allocation2]  }
   0x5   : > { %p5007_p3 = pnand %p3606_p0, %p136_p1  ;;  %s161_s19 = sshll.u32 %s4964_s18, 4  ;;  %s162_s19 = int_to_ptr.vmem [resolvable:$true] %s161_s19 }
   0x6   : > { %s148_s21 = sshll.u32 %s4965_s20, 4  ;;  %s4966_s23 = smov [#allocation6]   ;;  %s5013_s21 = int_to_ptr.vmem [resolvable:$true] %s148_s21 }
   0x7   : > { %p4831_p4 = pneg %p5007_p3  ;;  %s174_s24 = sshll.u32 %s4966_s23, 4  ;;  %s5021_s24 = int_to_ptr.vmem [resolvable:$true] %s174_s24 }
   0x8   : > { %s4881_s25 = scalar_lea.vmem %s162_s19, 36864  ;;  %p4889_p10 = scmp.lt.s32.totalorder %s162_s19, %s162_s19 }
   0x9   : > { %p5017_p5 = pnand %p4841_p2, %p4831_p4  ;;  %p4882_p7 = scmp.ne.s32.totalorder %s162_s19, %s4881_s25 }
   0xa   : > { %p4890_p11 = scmp.lt.s32.totalorder %s4881_s25, %s4881_s25 }
   0xb   : > { %p4872_p6 = pneg %p5017_p5 }
   0xc   : > { %p4891_p12 = por %p4890_p11, %p4889_p10 }
   0xd   : > { %p4884_p8 = pnand %p4882_p7, %p4872_p6 }
   0xf   : > { %p4885_p9 = pneg %p4884_p8 }
  0x11   : > { %p4892_p13 = pnand %p4891_p12, %p4885_p9 }
  0x13   : > { %4895 = shalt.err (!%p4892_p13)
}
  0x14   : > { %s4967_s26 = smov 128   ;;  %s4968_s27 = smov 8  }
  0x15   : > { %4837 = dma.hbm_to_vmem [thread:$0]  (!%p5017_p5), %s5221_s2, 36864, %s162_s19, [#allocation5], %s4967_s26, %s4967_s26, %s4968_s27  }
  0x16   : > { %s4907_s30 = scalar_lea.vmem %s5013_s21, 4608  ;;  %p4915_p7 = scmp.lt.s32.totalorder %s5013_s21, %s5013_s21 }
  0x17   : > { %p4908_p0 = scmp.ne.s32.totalorder %s5013_s21, %s4907_s30  ;;  %p4916_p8 = scmp.lt.s32.totalorder %s4907_s30, %s4907_s30 }
  0x19   : > { %p4910_p1 = pnand %p4908_p0, %p4872_p6  ;;  %p4917_p9 = por %p4916_p8, %p4915_p7 }
  0x1b   : > { %p4911_p4 = pneg %p4910_p1 }
  0x1d   : > { %p4918_p10 = pnand %p4917_p9, %p4911_p4 }
  0x1f   : > { %4921 = shalt.err (!%p4918_p10)
}
  0x20   : > { %4834 = dma.hbm_to_vmem [thread:$0]  (!%p5017_p5), %s5220_s1, 4608, %s5013_s21, [#allocation3], %s4967_s26, %s4967_s26, %s4968_s27  }
  0x21   : > { %s4933_s7 = scalar_lea.vmem %s5021_s24, 96  ;;  %p4941_p0 = scmp.lt.s32.totalorder %s5021_s24, %s5021_s24 }
  0x22   : > { %p4934_p11 = scmp.ne.s32.totalorder %s5021_s24, %s4933_s7  ;;  %p4942_p1 = scmp.lt.s32.totalorder %s4933_s7, %s4933_s7 }
  0x24   : > { %p4936_p12 = pnand %p4934_p11, %p4872_p6  ;;  %p4943_p4 = por %p4942_p1, %p4941_p0 }
  0x26   : > { %p4937_p13 = pneg %p4936_p12 }
  0x28   : > { %p4944_p7 = pnand %p4943_p4, %p4937_p13 }
  0x2a   : > { %4947 = shalt.err (!%p4944_p7)
}
  0x2b   : > { %s4969_s8 = smov 16   ;;  %s4970_s9 = smov 1  }
  0x2c   : > { %4840 = dma.hbm_to_vmem [thread:$0]  (!%p5017_p5), %s5222_s3, 96, %s5021_s24, [#allocation5], %s4969_s8, %s4969_s8, %s4970_s9  }
  0x2d   : > { %198 = sbr.rel (%p5007_p3) target bundleno = 3674 (0xe5a), region = 36 }
  0x32   : > { %4953 = dma.done.wait (%p4841_p2), [#allocation3], 4608  }
  0x33   : > { %4955 = vsyncadd (%p4841_p2), [#allocation3], 4294962688 }
  0x34   : > { %4957 = dma.done.wait (%p4841_p2), [#allocation5], 36960  }
  0x35   : > { %4959 = vsyncadd (%p4841_p2), [#allocation5], 4294930336  ;;  %p232_p6 = scmp.lt.s32.totalorder %s5002_s16, 1  ;;  %vm247_vm0 = vcmask 130048   ;;  %v245_v2 = vld [vmem:[#allocation2] sm:$0xff]  ;;  %v246_v3 = vld [vmem:[#allocation2 + $0x8] sm:$0xff] }
  0x36   : > { %4067 = vmatprep.mubr.msk.f32.mxu1 %vm247_vm0, %v245_v2  ;;  %v429_v4 = vld [vmem:[#allocation2 + $0x10] sm:$0xff]  ;;  %v344_v5 = vld [vmem:[#allocation4 + $0x78] sm:$0xff]  ;;  %v342_v9 = vld [vmem:[#allocation4 + $0x68] sm:$0xff] }
  0x37   : > { %s5227_s16 = smov (!%p232_p6, %s5002_s16), 1  ;;  %v430_v6 = vld [vmem:[#allocation2 + $0x18] sm:$0xff]  ;;  %v343_v7 = vld [vmem:[#allocation4 + $0x70] sm:$0xff]  ;;  %4109 = vmatprep.mubr.msk.f32.mxu0 %vm247_vm0, %v429_v4  ;;  %v341_v11 = vld [vmem:[#allocation4 + $0x60] sm:$0xff] }
  0x38   : > { %s3665_s12 = sshll.u32 %s5227_s16, 4  ;;  %v528_v8 = vld [vmem:[#allocation4 + $0xf8] sm:$0xff]  ;;  %v527_v10 = vld [vmem:[#allocation4 + $0xf0] sm:$0xff]  ;;  %v526_v12 = vld [vmem:[#allocation4 + $0xe8] sm:$0xff] }
  0x39   : > { %s236_s17 = scalar_lea.vmem %s5219_s0, %s3665_s12  ;;  %v340_v13 = vld [vmem:[#allocation4 + $0x58] sm:$0xff]  ;;  %v525_v14 = vld [vmem:[#allocation4 + $0xe0] sm:$0xff]  ;;  %v339_v15 = vld [vmem:[#allocation4 + $0x50] sm:$0xff]  ;;  %s241_s20 = scalar_lea.vmem %s5223_s4, %s3665_s12 }
  0x3a   : > { %v5079_v0 = vld [vmem:[%s236_s17 + $0x8] sm:$0xff]  ;;  %v5081_v1 = vld [vmem:[%s236_s17] sm:$0xff]  ;;  %v524_v16 = vld [vmem:[#allocation4 + $0xd8] sm:$0xff] }
  0x3b   : > { %4063 = vmatprep.subr.mxu1 %v5079_v0  ;;  %4105 = vmatprep.subr.mxu0 %v5079_v0  ;;  %v338_v17 = vld [vmem:[#allocation4 + $0x48] sm:$0xff]  ;;  %v523_v18 = vld [vmem:[#allocation4 + $0xd0] sm:$0xff]  ;;  %v337_v19 = vld [vmem:[#allocation4 + $0x40] sm:$0xff] }
  0x3c   : > { %4064 = vmatpush3.msra.mxu1 %v5079_v0  ;;  %4106 = vmatpush3.msra.mxu0 %v5079_v0  ;;  %v522_v20 = vld [vmem:[#allocation4 + $0xc8] sm:$0xff]  ;;  %v336_v21 = vld [vmem:[#allocation4 + $0x38] sm:$0xff]  ;;  %v521_v22 = vld [vmem:[#allocation4 + $0xc0] sm:$0xff] }
  0x3d   : > { %4065 = vmatprep.subr.mxu1 %v5081_v1  ;;  %4107 = vmatprep.subr.mxu0 %v5081_v1  ;;  %v335_v23 = vld [vmem:[#allocation4 + $0x30] sm:$0xff]  ;;  %v520_v24 = vld [vmem:[#allocation4 + $0xb8] sm:$0xff]  ;;  %v334_v25 = vld [vmem:[#allocation4 + $0x28] sm:$0xff] }
  0x3e   : > { %4066 = vmatpush3.msra.mxu1 %v5081_v1  ;;  %4108 = vmatpush3.msra.mxu0 %v5081_v1  ;;  %v519_v26 = vld [vmem:[#allocation4 + $0xb0] sm:$0xff]  ;;  %v333_v27 = vld [vmem:[#allocation4 + $0x20] sm:$0xff]  ;;  %v518_v28 = vld [vmem:[#allocation4 + $0xa8] sm:$0xff] }
  0x3f   : > { %4068 = vmatmul.mubr.msk.f32.vlgmr.msra.gmra.mxu1 %vm247_vm0, %v246_v3  ;;  %4070 = vmatprep.subr.mxu1 %v344_v5  ;;  %v332_v29 = vld [vmem:[#allocation4 + $0x18] sm:$0xff]  ;;  %v517_v30 = vld [vmem:[#allocation4 + $0xa0] sm:$0xff]  ;;  %v331_v31 = vld [vmem:[#allocation4 + $0x10] sm:$0xff] }
  0x40   : > { %4110 = vmatmul.mubr.msk.f32.vlgmr.msra.gmra.mxu0 %vm247_vm0, %v430_v6  ;;  %4071 = vmatpush3.msra.mxu1 %v344_v5  ;;  %v516_v32 = vld [vmem:[#allocation4 + $0x98] sm:$0xff]  ;;  %v330_v33 = vld [vmem:[#allocation4 + $0x8] sm:$0xff]  ;;  %v515_v34 = vld [vmem:[#allocation4 + $0x90] sm:$0xff] }
  0x41   : > { %4072 = vmatprep.subr.mxu1 %v343_v7  ;;  %4112 = vmatprep.subr.mxu0 %v528_v8  ;;  %v329_v35 = vld [vmem:[#allocation4] sm:$0xff]  ;;  %v514_v36 = vld [vmem:[#allocation4 + $0x88] sm:$0xff]  ;;  %v706_v44 = vld [vmem:[#allocation4 + $0x178] sm:$0xff] }
  0x42   : > { %4073 = vmatpush3.msra.mxu1 %v343_v7  ;;  %4113 = vmatpush3.msra.mxu0 %v528_v8  ;;  %v513_v37 = vld [vmem:[#allocation4 + $0x80] sm:$0xff]  ;;  %v608_v43 = vld [vmem:[#allocation2 + $0x28] sm:$0xff]  ;;  %v705_v45 = vld [vmem:[#allocation4 + $0x170] sm:$0xff] }
  0x43   : > { %4074 = vmatprep.subr.mxu1 %v342_v9  ;;  %4114 = vmatprep.subr.mxu0 %v527_v10  ;;  %v607_v42 = vld [vmem:[#allocation2 + $0x20] sm:$0xff]  ;;  %v704_v46 = vld [vmem:[#allocation4 + $0x168] sm:$0xff]  ;;  %v702_v48 = vld [vmem:[#allocation4 + $0x158] sm:$0xff] }
  0x44   : > { %4075 = vmatpush3.msra.mxu1 %v342_v9  ;;  %4115 = vmatpush3.msra.mxu0 %v527_v10  ;;  %v703_v47 = vld [vmem:[#allocation4 + $0x160] sm:$0xff]  ;;  %v701_v49 = vld [vmem:[#allocation4 + $0x150] sm:$0xff]  ;;  %v700_v50 = vld [vmem:[#allocation4 + $0x148] sm:$0xff] }
  0x45   : > { %4076 = vmatprep.subr.mxu1 %v341_v11  ;;  %4116 = vmatprep.subr.mxu0 %v526_v12  ;;  %v699_v51 = vld [vmem:[#allocation4 + $0x140] sm:$0xff]  ;;  %v698_v52 = vld [vmem:[#allocation4 + $0x138] sm:$0xff]  ;;  %v697_v53 = vld [vmem:[#allocation4 + $0x130] sm:$0xff] }
  0x46   : > { %4077 = vmatpush3.msra.mxu1 %v341_v11  ;;  %4117 = vmatpush3.msra.mxu0 %v526_v12  ;;  %v696_v54 = vld [vmem:[#allocation4 + $0x128] sm:$0xff]  ;;  %v695_v55 = vld [vmem:[#allocation4 + $0x120] sm:$0xff]  ;;  %v694_v56 = vld [vmem:[#allocation4 + $0x118] sm:$0xff] }
  0x47   : > { %4078 = vmatprep.subr.mxu1 %v340_v13  ;;  %4118 = vmatprep.subr.mxu0 %v525_v14  ;;  %v693_v57 = vld [vmem:[#allocation4 + $0x110] sm:$0xff]  ;;  %v692_v58 = vld [vmem:[#allocation4 + $0x108] sm:$0xff]  ;;  %v691_v59 = vld [vmem:[#allocation4 + $0x100] sm:$0xff] }
  0x48   : > { %4079 = vmatpush3.msra.mxu1 %v340_v13  ;;  %4119 = vmatpush3.msra.mxu0 %v525_v14  ;;  %v3621_v2 = vld [vmem:[#allocation6] ss:$0 sm:$0xff] }
  0x49   : > { %4080 = vmatprep.subr.mxu1 %v339_v15  ;;  %4120 = vmatprep.subr.mxu0 %v524_v16 }
  0x4a   : > { %4081 = vmatpush3.msra.mxu1 %v339_v15  ;;  %4121 = vmatpush3.msra.mxu0 %v524_v16  ;;  %v790_v15 = vld [vmem:[#allocation2 + $0x38] sm:$0xff] }
  0x4b   : > { %4082 = vmatprep.subr.mxu1 %v338_v17  ;;  %4122 = vmatprep.subr.mxu0 %v523_v18  ;;  %v888_v16 = vld [vmem:[#allocation4 + $0x1f8] sm:$0xff] }
  0x4c   : > { %4083 = vmatpush3.msra.mxu1 %v338_v17  ;;  %4123 = vmatpush3.msra.mxu0 %v523_v18  ;;  %v974_v17 = vld [vmem:[#allocation2 + $0x48] sm:$0xff]  ;;  %v887_v18 = vld [vmem:[#allocation4 + $0x1f0] sm:$0xff] }
  0x4d   : > { %4084 = vmatprep.subr.mxu1 %v337_v19  ;;  %4124 = vmatprep.subr.mxu0 %v522_v20 }
  0x4e   : > { %4085 = vmatpush3.msra.mxu1 %v337_v19  ;;  %4125 = vmatpush3.msra.mxu0 %v522_v20  ;;  %v1072_v19 = vld [vmem:[#allocation4 + $0x278] sm:$0xff]  ;;  %v886_v20 = vld [vmem:[#allocation4 + $0x1e8] sm:$0xff] }
  0x4f   : > { %4086 = vmatprep.subr.mxu1 %v336_v21  ;;  %4126 = vmatprep.subr.mxu0 %v521_v22 }
  0x50   : > { %4087 = vmatpush3.msra.mxu1 %v336_v21  ;;  %4127 = vmatpush3.msra.mxu0 %v521_v22  ;;  %v1071_v21 = vld [vmem:[#allocation4 + $0x270] sm:$0xff]  ;;  %v885_v22 = vld [vmem:[#allocation4 + $0x1e0] sm:$0xff] }
  0x51   : > { %4088 = vmatprep.subr.mxu1 %v335_v23  ;;  %4128 = vmatprep.subr.mxu0 %v520_v24 }
  0x52   : > { %4089 = vmatpush3.msra.mxu1 %v335_v23  ;;  %4129 = vmatpush3.msra.mxu0 %v520_v24  ;;  %v1070_v23 = vld [vmem:[#allocation4 + $0x268] sm:$0xff]  ;;  %v884_v24 = vld [vmem:[#allocation4 + $0x1d8] sm:$0xff] }
  0x53   : > { %4090 = vmatprep.subr.mxu1 %v334_v25  ;;  %4130 = vmatprep.subr.mxu0 %v519_v26 }
  0x54   : > { %4091 = vmatpush3.msra.mxu1 %v334_v25  ;;  %4131 = vmatpush3.msra.mxu0 %v519_v26  ;;  %v1069_v25 = vld [vmem:[#allocation4 + $0x260] sm:$0xff]  ;;  %v883_v26 = vld [vmem:[#allocation4 + $0x1d0] sm:$0xff] }
  0x55   : > { %4092 = vmatprep.subr.mxu1 %v333_v27  ;;  %4132 = vmatprep.subr.mxu0 %v518_v28 }
  0x56   : > { %4093 = vmatpush3.msra.mxu1 %v333_v27  ;;  %4133 = vmatpush3.msra.mxu0 %v518_v28  ;;  %v1068_v27 = vld [vmem:[#allocation4 + $0x258] sm:$0xff]  ;;  %v882_v28 = vld [vmem:[#allocation4 + $0x1c8] sm:$0xff] }
  0x57   : > { %4094 = vmatprep.subr.mxu1 %v332_v29  ;;  %4134 = vmatprep.subr.mxu0 %v517_v30 }
  0x58   : > { %4095 = vmatpush3.msra.mxu1 %v332_v29  ;;  %4135 = vmatpush3.msra.mxu0 %v517_v30  ;;  %v1067_v29 = vld [vmem:[#allocation4 + $0x250] sm:$0xff]  ;;  %v881_v30 = vld [vmem:[#allocation4 + $0x1c0] sm:$0xff] }
  0x59   : > { %4096 = vmatprep.subr.mxu1 %v331_v31  ;;  %4136 = vmatprep.subr.mxu0 %v516_v32 }
  0x5a   : > { %4097 = vmatpush3.msra.mxu1 %v331_v31  ;;  %4137 = vmatpush3.msra.mxu0 %v516_v32  ;;  %v1066_v31 = vld [vmem:[#allocation4 + $0x248] sm:$0xff]  ;;  %v880_v32 = vld [vmem:[#allocation4 + $0x1b8] sm:$0xff] }
  0x5b   : > { %4098 = vmatprep.subr.mxu1 %v330_v33  ;;  %4138 = vmatprep.subr.mxu0 %v515_v34 }
  0x5c   : > { %4099 = vmatpush3.msra.mxu1 %v330_v33  ;;  %4139 = vmatpush3.msra.mxu0 %v515_v34  ;;  %v1065_v33 = vld [vmem:[#allocation4 + $0x240] sm:$0xff]  ;;  %v879_v34 = vld [vmem:[#allocation4 + $0x1b0] sm:$0xff] }
  0x5d   : > { %4100 = vmatprep.subr.mxu1 %v329_v35  ;;  %4140 = vmatprep.subr.mxu0 %v514_v36 }
  0x5e   : > { %4101 = vmatpush3.msra.mxu1 %v329_v35  ;;  %4141 = vmatpush3.msra.mxu0 %v514_v36  ;;  %v1064_v35 = vld [vmem:[#allocation4 + $0x238] sm:$0xff]  ;;  %v878_v36 = vld [vmem:[#allocation4 + $0x1a8] sm:$0xff] }
  0x5f   : > { %4142 = vmatprep.subr.mxu0 %v513_v37  ;;  %4147 = vmatprep.subr.mxu1 %v5079_v0 }
  0x60   : > { %4143 = vmatpush3.msra.mxu0 %v513_v37  ;;  %v1063_v37 = vld [vmem:[#allocation4 + $0x230] sm:$0xff] }
  0xff   : > { %v4069_v38 = vpop.f32.mrf.mxu1 }
 0x100   : > { %v4111_v40 = vpop.f32.mrf.mxu0 }
 0x101   : > { %v320_v39 = vpop.f32.mrf.mxu1 }
 0x102   : > { %4102 = vmatprep.mubr.f32.mxu1 %v320_v39  ;;  %v503_v41 = vpop.f32.mrf.mxu0  ;;  %v1062_v39 = vld [vmem:[#allocation4 + $0x228] sm:$0xff] }
 0x103   : > { %4103 = vmatmul.mubr.f32.vlgmr.msra.gmra.mxu1 %v4069_v38  ;;  %4144 = vmatprep.mubr.f32.mxu0 %v503_v41  ;;  %v877_v38 = vld [vmem:[#allocation4 + $0x1a0] sm:$0xff] }
 0x104   : > { %4148 = vmatpush3.msra.mxu1 %v5079_v0  ;;  %4145 = vmatmul.mubr.f32.vlgmr.msra.gmra.mxu0 %v4111_v40  ;;  %v789_v0 = vld [vmem:[#allocation2 + $0x30] sm:$0xff]  ;;  %v876_v40 = vld [vmem:[#allocation4 + $0x198] sm:$0xff]  ;;  %v1061_v41 = vld [vmem:[#allocation4 + $0x220] sm:$0xff] }
 0x105   : > { %4149 = vmatprep.subr.mxu1 %v5081_v1  ;;  %4151 = vmatprep.mubr.msk.f32.mxu1 %vm247_vm0, %v607_v42  ;;  %v875_v42 = vld [vmem:[#allocation4 + $0x190] sm:$0xff] }
 0x106   : > { %4150 = vmatpush3.msra.mxu1 %v5081_v1  ;;  %4193 = vmatprep.mubr.msk.f32.mxu0 %vm247_vm0, %v789_v0  ;;  %v973_v1 = vld [vmem:[#allocation2 + $0x40] sm:$0xff]  ;;  %v1241_v0 = vld [vmem:[#allocation4 + $0x2b0] sm:$0xff] }
 0x107   : > { %4152 = vmatmul.mubr.msk.f32.vlgmr.msra.gmra.mxu1 %vm247_vm0, %v608_v43  ;;  %4154 = vmatprep.subr.mxu1 %v706_v44  ;;  %v1060_v43 = vld [vmem:[#allocation4 + $0x218] sm:$0xff] }
 0x108   : > { %4155 = vmatpush3.msra.mxu1 %v706_v44  ;;  %v874_v44 = vld [vmem:[#allocation4 + $0x188] sm:$0xff] }
 0x109   : > { %4156 = vmatprep.subr.mxu1 %v705_v45 }
 0x10a   : > { %4157 = vmatpush3.msra.mxu1 %v705_v45  ;;  %v873_v45 = vld [vmem:[#allocation4 + $0x180] sm:$0xff] }
 0x10b   : > { %4158 = vmatprep.subr.mxu1 %v704_v46 }
 0x10c   : > { %4159 = vmatpush3.msra.mxu1 %v704_v46  ;;  %v1059_v46 = vld [vmem:[#allocation4 + $0x210] sm:$0xff] }
 0x10d   : > { %4160 = vmatprep.subr.mxu1 %v703_v47 }
 0x10e   : > { %4161 = vmatpush3.msra.mxu1 %v703_v47  ;;  %v1058_v47 = vld [vmem:[#allocation4 + $0x208] sm:$0xff] }
 0x10f   : > { %4162 = vmatprep.subr.mxu1 %v702_v48 }
 0x110   : > { %4163 = vmatpush3.msra.mxu1 %v702_v48  ;;  %v1057_v48 = vld [vmem:[#allocation4 + $0x200] sm:$0xff] }
 0x111   : > { %4164 = vmatprep.subr.mxu1 %v701_v49 }
 0x112   : > { %4165 = vmatpush3.msra.mxu1 %v701_v49 }
 0x113   : > { %4166 = vmatprep.subr.mxu1 %v700_v50 }
 0x114   : > { %4167 = vmatpush3.msra.mxu1 %v700_v50 }
 0x115   : > { %4168 = vmatprep.subr.mxu1 %v699_v51 }
 0x116   : > { %4169 = vmatpush3.msra.mxu1 %v699_v51 }
 0x117   : > { %4170 = vmatprep.subr.mxu1 %v698_v52 }
 0x118   : > { %4171 = vmatpush3.msra.mxu1 %v698_v52 }
 0x119   : > { %4172 = vmatprep.subr.mxu1 %v697_v53 }
 0x11a   : > { %4173 = vmatpush3.msra.mxu1 %v697_v53  ;;  %v1151_v53 = vld [vmem:[#allocation2 + $0x50] sm:$0xff] }
 0x11b   : > { %4174 = vmatprep.subr.mxu1 %v696_v54 }
 0x11c   : > { %4175 = vmatpush3.msra.mxu1 %v696_v54  ;;  %v1152_v54 = vld [vmem:[#allocation2 + $0x58] sm:$0xff] }
 0x11d   : > { %4176 = vmatprep.subr.mxu1 %v695_v55 }
 0x11e   : > { %4177 = vmatpush3.msra.mxu1 %v695_v55  ;;  %v1250_v55 = vld [vmem:[#allocation4 + $0x2f8] sm:$0xff] }
 0x11f   : > { %4178 = vmatprep.subr.mxu1 %v694_v56 }
 0x120   : > { %4179 = vmatpush3.msra.mxu1 %v694_v56  ;;  %v1249_v56 = vld [vmem:[#allocation4 + $0x2f0] sm:$0xff] }
 0x121   : > { %4180 = vmatprep.subr.mxu1 %v693_v57 }
 0x122   : > { %4181 = vmatpush3.msra.mxu1 %v693_v57  ;;  %v1248_v57 = vld [vmem:[#allocation4 + $0x2e8] sm:$0xff] }
 0x123   : > { %4182 = vmatprep.subr.mxu1 %v692_v58 }
 0x124   : > { %4183 = vmatpush3.msra.mxu1 %v692_v58  ;;  %v1247_v58 = vld [vmem:[#allocation4 + $0x2e0] sm:$0xff] }
 0x125   : > { %4184 = vmatprep.subr.mxu1 %v691_v59 }
 0x126   : > { %4185 = vmatpush3.msra.mxu1 %v691_v59  ;;  %v1246_v59 = vld [vmem:[#allocation4 + $0x2d8] sm:$0xff] }
 0x1c3   : > { %v4104_v60 = vpop.f32.mrf.mxu1 }
 0x1c4   : > { %v4146_v3 = vpop.f32.mrf.mxu0  ;;  %v427_v4 = vadd.f32 %v4104_v60, %v3621_v2  ;;  %v1245_v60 = vld [vmem:[#allocation4 + $0x2d0] sm:$0xff] }
 0x1c5   : > { %v411_v61 = vpop.f32.mrf.mxu1 }
 0x1c6   : > { %v426_v5 = vadd.f32 %v3621_v2, %v411_v61  ;;  %v595_v6 = vpop.f32.mrf.mxu0  ;;  %v605_v7 = vadd.f32 %v4146_v3, %v427_v4  ;;  %v1244_v61 = vld [vmem:[#allocation4 + $0x2c8] sm:$0xff]  ;;  %v1239_v2 = vld [vmem:[#allocation4 + $0x2a0] sm:$0xff]  ;;  %v1238_v3 = vld [vmem:[#allocation4 + $0x298] sm:$0xff] }
 0x1c7   : > { %v4153_v62 = vpop.f32.mrf.mxu1  ;;  %v1237_v4 = vld [vmem:[#allocation4 + $0x290] sm:$0xff] }
 0x1c8   : > { %v604_v9 = vadd.f32 %v595_v6, %v426_v5  ;;  %v1236_v5 = vld [vmem:[#allocation4 + $0x288] sm:$0xff]  ;;  %v1235_v6 = vld [vmem:[#allocation4 + $0x280] sm:$0xff] }
 0x1c9   : > { %v681_v63 = vpop.f32.mrf.mxu1 }
 0x1ca   : > { %4186 = vmatprep.mubr.f32.mxu1 %v681_v63  ;;  %v1242_v63 = vld [vmem:[#allocation4 + $0x2b8] sm:$0xff] }
 0x1cb   : > { %4187 = vmatmul.mubr.f32.vlgmr.msra.gmra.mxu1 %v4153_v62  ;;  %v1243_v62 = vld [vmem:[#allocation4 + $0x2c0] sm:$0xff] }
 0x1cc   : > { %4235 = vmatprep.mubr.msk.f32.mxu1 %vm247_vm0, %v973_v1  ;;  %v1240_v1 = vld [vmem:[#allocation4 + $0x2a8] sm:$0xff] }
 0x28b   : > { %v4188_v8 = vpop.f32.mrf.mxu1 }
 0x28c   : > { %v783_v10 = vadd.f32 %v4188_v8, %v605_v7 }
 0x28d   : > { %v773_v11 = vpop.f32.mrf.mxu1 }
 0x28e   : > { %v5103_v12 = vmax.f32 %v783_v10, 0.0  ;;  %v782_v13 = vadd.f32 %v773_v11, %v604_v9  ;;  %v1333_v11 = vld [vmem:[#allocation2 + $0x60] sm:$0xff] }
 0x290   : > { %v5105_v14 = vmax.f32 %v782_v13, 0.0  ;;  %4189 = vmatprep.subr.mxu0 %v5103_v12  ;;  %4231 = vmatprep.subr.mxu1 %v5103_v12  ;;  %v3628_v13 = vld [vmem:[#allocation6 + $0x1] ss:$0 sm:$0xff] }
 0x291   : > { %4190 = vmatpush3.msra.mxu0 %v5103_v12  ;;  %4232 = vmatpush3.msra.mxu1 %v5103_v12 }
 0x292   : > { %4191 = vmatprep.subr.mxu0 %v5105_v14  ;;  %4233 = vmatprep.subr.mxu1 %v5105_v14 }
 0x293   : > { %4192 = vmatpush3.msra.mxu0 %v5105_v14  ;;  %4234 = vmatpush3.msra.mxu1 %v5105_v14 }
 0x294   : > { %4194 = vmatmul.mubr.msk.f32.vlgmr.msra.gmra.mxu0 %vm247_vm0, %v790_v15  ;;  %4196 = vmatprep.subr.mxu0 %v888_v16 }
 0x295   : > { %4197 = vmatpush3.msra.mxu0 %v888_v16  ;;  %4236 = vmatmul.mubr.msk.f32.vlgmr.msra.gmra.mxu1 %vm247_vm0, %v974_v17 }
 0x296   : > { %4198 = vmatprep.subr.mxu0 %v887_v18  ;;  %4238 = vmatprep.subr.mxu1 %v1072_v19 }
 0x297   : > { %4199 = vmatpush3.msra.mxu0 %v887_v18  ;;  %4239 = vmatpush3.msra.mxu1 %v1072_v19 }
 0x298   : > { %4200 = vmatprep.subr.mxu0 %v886_v20  ;;  %4240 = vmatprep.subr.mxu1 %v1071_v21 }
 0x299   : > { %4201 = vmatpush3.msra.mxu0 %v886_v20  ;;  %4241 = vmatpush3.msra.mxu1 %v1071_v21 }
 0x29a   : > { %4202 = vmatprep.subr.mxu0 %v885_v22  ;;  %4242 = vmatprep.subr.mxu1 %v1070_v23 }
 0x29b   : > { %4203 = vmatpush3.msra.mxu0 %v885_v22  ;;  %4243 = vmatpush3.msra.mxu1 %v1070_v23 }
 0x29c   : > { %4204 = vmatprep.subr.mxu0 %v884_v24  ;;  %4244 = vmatprep.subr.mxu1 %v1069_v25 }
 0x29d   : > { %4205 = vmatpush3.msra.mxu0 %v884_v24  ;;  %4245 = vmatpush3.msra.mxu1 %v1069_v25 }
 0x29e   : > { %4206 = vmatprep.subr.mxu0 %v883_v26  ;;  %4246 = vmatprep.subr.mxu1 %v1068_v27 }
 0x29f   : > { %4207 = vmatpush3.msra.mxu0 %v883_v26  ;;  %4247 = vmatpush3.msra.mxu1 %v1068_v27  ;;  %v1334_v26 = vld [vmem:[#allocation2 + $0x68] sm:$0xff]  ;;  %v1432_v27 = vld [vmem:[#allocation4 + $0x378] sm:$0xff] }
 0x2a0   : > { %4208 = vmatprep.subr.mxu0 %v882_v28  ;;  %4248 = vmatprep.subr.mxu1 %v1067_v29 }
 0x2a1   : > { %4209 = vmatpush3.msra.mxu0 %v882_v28  ;;  %4249 = vmatpush3.msra.mxu1 %v1067_v29  ;;  %v1518_v28 = vld [vmem:[#allocation2 + $0x78] sm:$0xff]  ;;  %v1431_v29 = vld [vmem:[#allocation4 + $0x370] sm:$0xff] }
 0x2a2   : > { %4210 = vmatprep.subr.mxu0 %v881_v30  ;;  %4250 = vmatprep.subr.mxu1 %v1066_v31 }
 0x2a3   : > { %4211 = vmatpush3.msra.mxu0 %v881_v30  ;;  %4251 = vmatpush3.msra.mxu1 %v1066_v31  ;;  %v1616_v30 = vld [vmem:[#allocation4 + $0x3f8] sm:$0xff]  ;;  %v1430_v31 = vld [vmem:[#allocation4 + $0x368] sm:$0xff] }
 0x2a4   : > { %4212 = vmatprep.subr.mxu0 %v880_v32  ;;  %4252 = vmatprep.subr.mxu1 %v1065_v33 }
 0x2a5   : > { %4213 = vmatpush3.msra.mxu0 %v880_v32  ;;  %4253 = vmatpush3.msra.mxu1 %v1065_v33  ;;  %v1615_v32 = vld [vmem:[#allocation4 + $0x3f0] sm:$0xff]  ;;  %v1429_v33 = vld [vmem:[#allocation4 + $0x360] sm:$0xff] }
 0x2a6   : > { %4214 = vmatprep.subr.mxu0 %v879_v34  ;;  %4254 = vmatprep.subr.mxu1 %v1064_v35 }
 0x2a7   : > { %4215 = vmatpush3.msra.mxu0 %v879_v34  ;;  %4255 = vmatpush3.msra.mxu1 %v1064_v35  ;;  %v1614_v34 = vld [vmem:[#allocation4 + $0x3e8] sm:$0xff]  ;;  %v1428_v35 = vld [vmem:[#allocation4 + $0x358] sm:$0xff] }
 0x2a8   : > { %4216 = vmatprep.subr.mxu0 %v878_v36  ;;  %4256 = vmatprep.subr.mxu1 %v1063_v37 }
 0x2a9   : > { %4217 = vmatpush3.msra.mxu0 %v878_v36  ;;  %4257 = vmatpush3.msra.mxu1 %v1063_v37  ;;  %v1613_v36 = vld [vmem:[#allocation4 + $0x3e0] sm:$0xff]  ;;  %v1427_v37 = vld [vmem:[#allocation4 + $0x350] sm:$0xff] }
 0x2aa   : > { %4218 = vmatprep.subr.mxu0 %v877_v38  ;;  %4258 = vmatprep.subr.mxu1 %v1062_v39 }
 0x2ab   : > { %4219 = vmatpush3.msra.mxu0 %v877_v38  ;;  %4259 = vmatpush3.msra.mxu1 %v1062_v39  ;;  %v1612_v38 = vld [vmem:[#allocation4 + $0x3d8] sm:$0xff]  ;;  %v1426_v39 = vld [vmem:[#allocation4 + $0x348] sm:$0xff] }
 0x2ac   : > { %4220 = vmatprep.subr.mxu0 %v876_v40  ;;  %4260 = vmatprep.subr.mxu1 %v1061_v41 }
 0x2ad   : > { %4221 = vmatpush3.msra.mxu0 %v876_v40  ;;  %4261 = vmatpush3.msra.mxu1 %v1061_v41  ;;  %v1611_v40 = vld [vmem:[#allocation4 + $0x3d0] sm:$0xff]  ;;  %v1425_v41 = vld [vmem:[#allocation4 + $0x340] sm:$0xff] }
 0x2ae   : > { %4222 = vmatprep.subr.mxu0 %v875_v42  ;;  %4262 = vmatprep.subr.mxu1 %v1060_v43 }
 0x2af   : > { %4223 = vmatpush3.msra.mxu0 %v875_v42  ;;  %4263 = vmatpush3.msra.mxu1 %v1060_v43  ;;  %v1610_v42 = vld [vmem:[#allocation4 + $0x3c8] sm:$0xff]  ;;  %v1424_v43 = vld [vmem:[#allocation4 + $0x338] sm:$0xff] }
 0x2b0   : > { %4224 = vmatprep.subr.mxu0 %v874_v44  ;;  %4264 = vmatprep.subr.mxu1 %v1059_v46 }
 0x2b1   : > { %4225 = vmatpush3.msra.mxu0 %v874_v44  ;;  %4265 = vmatpush3.msra.mxu1 %v1059_v46  ;;  %v1609_v44 = vld [vmem:[#allocation4 + $0x3c0] sm:$0xff]  ;;  %v1608_v46 = vld [vmem:[#allocation4 + $0x3b8] sm:$0xff] }
 0x2b2   : > { %4226 = vmatprep.subr.mxu0 %v873_v45  ;;  %4266 = vmatprep.subr.mxu1 %v1058_v47 }
 0x2b3   : > { %4227 = vmatpush3.msra.mxu0 %v873_v45  ;;  %4267 = vmatpush3.msra.mxu1 %v1058_v47  ;;  %v1423_v45 = vld [vmem:[#allocation4 + $0x330] sm:$0xff]  ;;  %v1422_v47 = vld [vmem:[#allocation4 + $0x328] sm:$0xff] }
 0x2b4   : > { %4273 = vmatprep.subr.mxu0 %v5103_v12  ;;  %4268 = vmatprep.subr.mxu1 %v1057_v48 }
 0x2b5   : > { %4269 = vmatpush3.msra.mxu1 %v1057_v48  ;;  %v1607_v48 = vld [vmem:[#allocation4 + $0x3b0] sm:$0xff] }
 0x354   : > { %v4195_v49 = vpop.f32.mrf.mxu0 }
 0x355   : > { %v4237_v50 = vpop.f32.mrf.mxu1 }
 0x356   : > { %v863_v51 = vpop.f32.mrf.mxu0 }
 0x357   : > { %4228 = vmatprep.mubr.f32.mxu0 %v863_v51  ;;  %v1047_v52 = vpop.f32.mrf.mxu1  ;;  %v1420_v51 = vld [vmem:[#allocation4 + $0x318] sm:$0xff] }
 0x358   : > { %4229 = vmatmul.mubr.f32.vlgmr.msra.gmra.mxu0 %v4195_v49  ;;  %4270 = vmatprep.mubr.f32.mxu1 %v1047_v52  ;;  %v1421_v49 = vld [vmem:[#allocation4 + $0x320] sm:$0xff] }
 0x359   : > { %4274 = vmatpush3.msra.mxu0 %v5103_v12  ;;  %4271 = vmatmul.mubr.f32.vlgmr.msra.gmra.mxu1 %v4237_v50  ;;  %v1517_v12 = vld [vmem:[#allocation2 + $0x70] sm:$0xff]  ;;  %v1606_v50 = vld [vmem:[#allocation4 + $0x3a8] sm:$0xff]  ;;  %v1605_v52 = vld [vmem:[#allocation4 + $0x3a0] sm:$0xff] }
 0x35a   : > { %4275 = vmatprep.subr.mxu0 %v5105_v14  ;;  %4277 = vmatprep.mubr.msk.f32.mxu0 %vm247_vm0, %v1151_v53  ;;  %v1419_v53 = vld [vmem:[#allocation4 + $0x310] sm:$0xff] }
 0x35b   : > { %4276 = vmatpush3.msra.mxu0 %v5105_v14  ;;  %4319 = vmatprep.mubr.msk.f32.mxu1 %vm247_vm0, %v1333_v11  ;;  %v1785_v11 = vld [vmem:[#allocation4 + $0x430] sm:$0xff] }
 0x35c   : > { %4278 = vmatmul.mubr.msk.f32.vlgmr.msra.gmra.mxu0 %vm247_vm0, %v1152_v54  ;;  %4280 = vmatprep.subr.mxu0 %v1250_v55  ;;  %v1604_v54 = vld [vmem:[#allocation4 + $0x398] sm:$0xff] }
 0x35d   : > { %4281 = vmatpush3.msra.mxu0 %v1250_v55  ;;  %v1418_v55 = vld [vmem:[#allocation4 + $0x308] sm:$0xff] }
 0x35e   : > { %4282 = vmatprep.subr.mxu0 %v1249_v56 }
 0x35f   : > { %4283 = vmatpush3.msra.mxu0 %v1249_v56  ;;  %v1417_v56 = vld [vmem:[#allocation4 + $0x300] sm:$0xff] }
 0x360   : > { %4284 = vmatprep.subr.mxu0 %v1248_v57 }
 0x361   : > { %4285 = vmatpush3.msra.mxu0 %v1248_v57  ;;  %v1603_v57 = vld [vmem:[#allocation4 + $0x390] sm:$0xff] }
 0x362   : > { %4286 = vmatprep.subr.mxu0 %v1247_v58 }
 0x363   : > { %4287 = vmatpush3.msra.mxu0 %v1247_v58  ;;  %v1602_v58 = vld [vmem:[#allocation4 + $0x388] sm:$0xff] }
 0x364   : > { %4288 = vmatprep.subr.mxu0 %v1246_v59 }
 0x365   : > { %4289 = vmatpush3.msra.mxu0 %v1246_v59  ;;  %v1601_v59 = vld [vmem:[#allocation4 + $0x380] sm:$0xff] }
 0x366   : > { %4290 = vmatprep.subr.mxu0 %v1245_v60 }
 0x367   : > { %4291 = vmatpush3.msra.mxu0 %v1245_v60 }
 0x368   : > { %4292 = vmatprep.subr.mxu0 %v1244_v61 }
 0x369   : > { %4293 = vmatpush3.msra.mxu0 %v1244_v61 }
 0x36a   : > { %4294 = vmatprep.subr.mxu0 %v1243_v62 }
 0x36b   : > { %4295 = vmatpush3.msra.mxu0 %v1243_v62 }
 0x36c   : > { %4296 = vmatprep.subr.mxu0 %v1242_v63 }
 0x36d   : > { %4297 = vmatpush3.msra.mxu0 %v1242_v63 }
 0x36e   : > { %4298 = vmatprep.subr.mxu0 %v1241_v0 }
 0x36f   : > { %4299 = vmatpush3.msra.mxu0 %v1241_v0  ;;  %v1695_v0 = vld [vmem:[#allocation2 + $0x80] sm:$0xff] }
 0x370   : > { %4300 = vmatprep.subr.mxu0 %v1240_v1 }
 0x371   : > { %4301 = vmatpush3.msra.mxu0 %v1240_v1  ;;  %v1696_v1 = vld [vmem:[#allocation2 + $0x88] sm:$0xff] }
 0x372   : > { %4302 = vmatprep.subr.mxu0 %v1239_v2 }
 0x373   : > { %4303 = vmatpush3.msra.mxu0 %v1239_v2  ;;  %v1794_v2 = vld [vmem:[#allocation4 + $0x478] sm:$0xff] }
 0x374   : > { %4304 = vmatprep.subr.mxu0 %v1238_v3 }
 0x375   : > { %4305 = vmatpush3.msra.mxu0 %v1238_v3  ;;  %v1793_v3 = vld [vmem:[#allocation4 + $0x470] sm:$0xff] }
 0x376   : > { %4306 = vmatprep.subr.mxu0 %v1237_v4 }
 0x377   : > { %4307 = vmatpush3.msra.mxu0 %v1237_v4  ;;  %v1792_v4 = vld [vmem:[#allocation4 + $0x468] sm:$0xff] }
 0x378   : > { %4308 = vmatprep.subr.mxu0 %v1236_v5 }
 0x379   : > { %4309 = vmatpush3.msra.mxu0 %v1236_v5  ;;  %v1791_v5 = vld [vmem:[#allocation4 + $0x460] sm:$0xff] }
 0x37a   : > { %4310 = vmatprep.subr.mxu0 %v1235_v6 }
 0x37b   : > { %4311 = vmatpush3.msra.mxu0 %v1235_v6  ;;  %v1790_v6 = vld [vmem:[#allocation4 + $0x458] sm:$0xff] }
 0x418   : > { %v4230_v7 = vpop.f32.mrf.mxu0 }
 0x419   : > { %v4272_v14 = vpop.f32.mrf.mxu1  ;;  %v971_v15 = vadd.f32 %v4230_v7, %v3628_v13  ;;  %v1789_v7 = vld [vmem:[#allocation4 + $0x450] sm:$0xff] }
 0x41a   : > { %v955_v8 = vpop.f32.mrf.mxu0 }
 0x41b   : > { %v970_v16 = vadd.f32 %v3628_v13, %v955_v8  ;;  %v1139_v17 = vpop.f32.mrf.mxu1  ;;  %v1149_v18 = vadd.f32 %v4272_v14, %v971_v15  ;;  %v1788_v8 = vld [vmem:[#allocation4 + $0x448] sm:$0xff]  ;;  %v1783_v13 = vld [vmem:[#allocation4 + $0x420] sm:$0xff]  ;;  %v1782_v14 = vld [vmem:[#allocation4 + $0x418] sm:$0xff] }
 0x41c   : > { %v4279_v9 = vpop.f32.mrf.mxu0  ;;  %v1781_v15 = vld [vmem:[#allocation4 + $0x410] sm:$0xff] }
 0x41d   : > { %v1148_v20 = vadd.f32 %v1139_v17, %v970_v16  ;;  %v1780_v16 = vld [vmem:[#allocation4 + $0x408] sm:$0xff]  ;;  %v1779_v17 = vld [vmem:[#allocation4 + $0x400] sm:$0xff] }
 0x41e   : > { %v1225_v10 = vpop.f32.mrf.mxu0 }
 0x41f   : > { %4312 = vmatprep.mubr.f32.mxu0 %v1225_v10  ;;  %v1786_v10 = vld [vmem:[#allocation4 + $0x438] sm:$0xff] }
 0x420   : > { %4313 = vmatmul.mubr.f32.vlgmr.msra.gmra.mxu0 %v4279_v9  ;;  %v1787_v9 = vld [vmem:[#allocation4 + $0x440] sm:$0xff] }
 0x421   : > { %4361 = vmatprep.mubr.msk.f32.mxu0 %vm247_vm0, %v1517_v12  ;;  %v1784_v12 = vld [vmem:[#allocation4 + $0x428] sm:$0xff] }
 0x4e0   : > { %v4314_v19 = vpop.f32.mrf.mxu0 }
 0x4e1   : > { %v1327_v21 = vadd.f32 %v4314_v19, %v1149_v18 }
 0x4e2   : > { %v1317_v22 = vpop.f32.mrf.mxu0 }
 0x4e3   : > { %v5125_v23 = vmax.f32 %v1327_v21, 0.0  ;;  %v1326_v24 = vadd.f32 %v1317_v22, %v1148_v20  ;;  %v1877_v22 = vld [vmem:[#allocation2 + $0x90] sm:$0xff] }
 0x4e5   : > { %v5127_v25 = vmax.f32 %v1326_v24, 0.0  ;;  %4315 = vmatprep.subr.mxu1 %v5125_v23  ;;  %4357 = vmatprep.subr.mxu0 %v5125_v23  ;;  %v3635_v24 = vld [vmem:[#allocation6 + $0x2] ss:$0 sm:$0xff] }
 0x4e6   : > { %4316 = vmatpush3.msra.mxu1 %v5125_v23  ;;  %4358 = vmatpush3.msra.mxu0 %v5125_v23 }
 0x4e7   : > { %4317 = vmatprep.subr.mxu1 %v5127_v25  ;;  %4359 = vmatprep.subr.mxu0 %v5127_v25 }
 0x4e8   : > { %4318 = vmatpush3.msra.mxu1 %v5127_v25  ;;  %4360 = vmatpush3.msra.mxu0 %v5127_v25 }
 0x4e9   : > { %4320 = vmatmul.mubr.msk.f32.vlgmr.msra.gmra.mxu1 %vm247_vm0, %v1334_v26  ;;  %4322 = vmatprep.subr.mxu1 %v1432_v27 }
 0x4ea   : > { %4323 = vmatpush3.msra.mxu1 %v1432_v27  ;;  %4362 = vmatmul.mubr.msk.f32.vlgmr.msra.gmra.mxu0 %vm247_vm0, %v1518_v28 }
 0x4eb   : > { %4324 = vmatprep.subr.mxu1 %v1431_v29  ;;  %4364 = vmatprep.subr.mxu0 %v1616_v30 }
 0x4ec   : > { %4325 = vmatpush3.msra.mxu1 %v1431_v29  ;;  %4365 = vmatpush3.msra.mxu0 %v1616_v30 }
 0x4ed   : > { %4326 = vmatprep.subr.mxu1 %v1430_v31  ;;  %4366 = vmatprep.subr.mxu0 %v1615_v32 }
 0x4ee   : > { %4327 = vmatpush3.msra.mxu1 %v1430_v31  ;;  %4367 = vmatpush3.msra.mxu0 %v1615_v32 }
 0x4ef   : > { %4328 = vmatprep.subr.mxu1 %v1429_v33  ;;  %4368 = vmatprep.subr.mxu0 %v1614_v34 }
 0x4f0   : > { %4329 = vmatpush3.msra.mxu1 %v1429_v33  ;;  %4369 = vmatpush3.msra.mxu0 %v1614_v34 }
 0x4f1   : > { %4330 = vmatprep.subr.mxu1 %v1428_v35  ;;  %4370 = vmatprep.subr.mxu0 %v1613_v36 }
 0x4f2   : > { %4331 = vmatpush3.msra.mxu1 %v1428_v35  ;;  %4371 = vmatpush3.msra.mxu0 %v1613_v36 }
 0x4f3   : > { %4332 = vmatprep.subr.mxu1 %v1427_v37  ;;  %4372 = vmatprep.subr.mxu0 %v1612_v38 }
 0x4f4   : > { %4333 = vmatpush3.msra.mxu1 %v1427_v37  ;;  %4373 = vmatpush3.msra.mxu0 %v1612_v38  ;;  %v1878_v37 = vld [vmem:[#allocation2 + $0x98] sm:$0xff] }
 0x4f5   : > { %4334 = vmatprep.subr.mxu1 %v1426_v39  ;;  %4374 = vmatprep.subr.mxu0 %v1611_v40  ;;  %v1976_v38 = vld [vmem:[#allocation4 + $0x4f8] sm:$0xff] }
 0x4f6   : > { %4335 = vmatpush3.msra.mxu1 %v1426_v39  ;;  %4375 = vmatpush3.msra.mxu0 %v1611_v40  ;;  %v2062_v39 = vld [vmem:[#allocation2 + $0xa8] sm:$0xff]  ;;  %v1975_v40 = vld [vmem:[#allocation4 + $0x4f0] sm:$0xff] }
 0x4f7   : > { %4336 = vmatprep.subr.mxu1 %v1425_v41  ;;  %4376 = vmatprep.subr.mxu0 %v1610_v42 }
 0x4f8   : > { %4337 = vmatpush3.msra.mxu1 %v1425_v41  ;;  %4377 = vmatpush3.msra.mxu0 %v1610_v42  ;;  %v2160_v41 = vld [vmem:[#allocation4 + $0x578] sm:$0xff]  ;;  %v1974_v42 = vld [vmem:[#allocation4 + $0x4e8] sm:$0xff] }
 0x4f9   : > { %4338 = vmatprep.subr.mxu1 %v1424_v43  ;;  %4378 = vmatprep.subr.mxu0 %v1609_v44 }
 0x4fa   : > { %4339 = vmatpush3.msra.mxu1 %v1424_v43  ;;  %4379 = vmatpush3.msra.mxu0 %v1609_v44  ;;  %v2159_v43 = vld [vmem:[#allocation4 + $0x570] sm:$0xff]  ;;  %v1973_v44 = vld [vmem:[#allocation4 + $0x4e0] sm:$0xff] }
 0x4fb   : > { %4340 = vmatprep.subr.mxu1 %v1423_v45  ;;  %4380 = vmatprep.subr.mxu0 %v1608_v46 }
 0x4fc   : > { %4341 = vmatpush3.msra.mxu1 %v1423_v45  ;;  %4381 = vmatpush3.msra.mxu0 %v1608_v46  ;;  %v2158_v45 = vld [vmem:[#allocation4 + $0x568] sm:$0xff]  ;;  %v1972_v46 = vld [vmem:[#allocation4 + $0x4d8] sm:$0xff] }
 0x4fd   : > { %4342 = vmatprep.subr.mxu1 %v1422_v47  ;;  %4382 = vmatprep.subr.mxu0 %v1607_v48 }
 0x4fe   : > { %4343 = vmatpush3.msra.mxu1 %v1422_v47  ;;  %4383 = vmatpush3.msra.mxu0 %v1607_v48  ;;  %v2157_v47 = vld [vmem:[#allocation4 + $0x560] sm:$0xff]  ;;  %v1971_v48 = vld [vmem:[#allocation4 + $0x4d0] sm:$0xff] }
 0x4ff   : > { %4344 = vmatprep.subr.mxu1 %v1421_v49  ;;  %4384 = vmatprep.subr.mxu0 %v1606_v50 }
 0x500   : > { %4345 = vmatpush3.msra.mxu1 %v1421_v49  ;;  %4385 = vmatpush3.msra.mxu0 %v1606_v50  ;;  %v2156_v49 = vld [vmem:[#allocation4 + $0x558] sm:$0xff]  ;;  %v1970_v50 = vld [vmem:[#allocation4 + $0x4c8] sm:$0xff] }
 0x501   : > { %4346 = vmatprep.subr.mxu1 %v1420_v51  ;;  %4386 = vmatprep.subr.mxu0 %v1605_v52 }
 0x502   : > { %4347 = vmatpush3.msra.mxu1 %v1420_v51  ;;  %4387 = vmatpush3.msra.mxu0 %v1605_v52  ;;  %v2155_v51 = vld [vmem:[#allocation4 + $0x550] sm:$0xff]  ;;  %v1969_v52 = vld [vmem:[#allocation4 + $0x4c0] sm:$0xff] }
 0x503   : > { %4348 = vmatprep.subr.mxu1 %v1419_v53  ;;  %4388 = vmatprep.subr.mxu0 %v1604_v54 }
 0x504   : > { %4349 = vmatpush3.msra.mxu1 %v1419_v53  ;;  %4389 = vmatpush3.msra.mxu0 %v1604_v54  ;;  %v2154_v53 = vld [vmem:[#allocation4 + $0x548] sm:$0xff]  ;;  %v1968_v54 = vld [vmem:[#allocation4 + $0x4b8] sm:$0xff] }
 0x505   : > { %4350 = vmatprep.subr.mxu1 %v1418_v55  ;;  %4390 = vmatprep.subr.mxu0 %v1603_v57 }
 0x506   : > { %4351 = vmatpush3.msra.mxu1 %v1418_v55  ;;  %4391 = vmatpush3.msra.mxu0 %v1603_v57  ;;  %v2153_v55 = vld [vmem:[#allocation4 + $0x540] sm:$0xff]  ;;  %v2152_v57 = vld [vmem:[#allocation4 + $0x538] sm:$0xff] }
 0x507   : > { %4352 = vmatprep.subr.mxu1 %v1417_v56  ;;  %4392 = vmatprep.subr.mxu0 %v1602_v58 }
 0x508   : > { %4353 = vmatpush3.msra.mxu1 %v1417_v56  ;;  %4393 = vmatpush3.msra.mxu0 %v1602_v58  ;;  %v1967_v56 = vld [vmem:[#allocation4 + $0x4b0] sm:$0xff]  ;;  %v1966_v58 = vld [vmem:[#allocation4 + $0x4a8] sm:$0xff] }
 0x509   : > { %4399 = vmatprep.subr.mxu1 %v5125_v23  ;;  %4394 = vmatprep.subr.mxu0 %v1601_v59 }
 0x50a   : > { %4395 = vmatpush3.msra.mxu0 %v1601_v59  ;;  %v2151_v59 = vld [vmem:[#allocation4 + $0x530] sm:$0xff] }
 0x5a9   : > { %v4321_v60 = vpop.f32.mrf.mxu1 }
 0x5aa   : > { %v4363_v61 = vpop.f32.mrf.mxu0 }
 0x5ab   : > { %v1407_v62 = vpop.f32.mrf.mxu1 }
 0x5ac   : > { %4354 = vmatprep.mubr.f32.mxu1 %v1407_v62  ;;  %v1591_v63 = vpop.f32.mrf.mxu0  ;;  %v1964_v62 = vld [vmem:[#allocation4 + $0x498] sm:$0xff] }
 0x5ad   : > { %4355 = vmatmul.mubr.f32.vlgmr.msra.gmra.mxu1 %v4321_v60  ;;  %4396 = vmatprep.mubr.f32.mxu0 %v1591_v63  ;;  %v1965_v60 = vld [vmem:[#allocation4 + $0x4a0] sm:$0xff] }
 0x5ae   : > { %4400 = vmatpush3.msra.mxu1 %v5125_v23  ;;  %4397 = vmatmul.mubr.f32.vlgmr.msra.gmra.mxu0 %v4363_v61  ;;  %v2061_v23 = vld [vmem:[#allocation2 + $0xa0] sm:$0xff]  ;;  %v2150_v61 = vld [vmem:[#allocation4 + $0x528] sm:$0xff] }
 0x5af   : > { %4401 = vmatprep.subr.mxu1 %v5127_v25  ;;  %4403 = vmatprep.mubr.msk.f32.mxu1 %vm247_vm0, %v1695_v0  ;;  %v2149_v63 = vld [vmem:[#allocation4 + $0x520] sm:$0xff]  ;;  %v1963_v0 = vld [vmem:[#allocation4 + $0x490] sm:$0xff] }
 0x5b0   : > { %4402 = vmatpush3.msra.mxu1 %v5127_v25  ;;  %4445 = vmatprep.mubr.msk.f32.mxu0 %vm247_vm0, %v1877_v22  ;;  %v2329_v22 = vld [vmem:[#allocation4 + $0x5b0] sm:$0xff] }
 0x5b1   : > { %4404 = vmatmul.mubr.msk.f32.vlgmr.msra.gmra.mxu1 %vm247_vm0, %v1696_v1  ;;  %4406 = vmatprep.subr.mxu1 %v1794_v2  ;;  %v2148_v1 = vld [vmem:[#allocation4 + $0x518] sm:$0xff] }
 0x5b2   : > { %4407 = vmatpush3.msra.mxu1 %v1794_v2  ;;  %v1962_v2 = vld [vmem:[#allocation4 + $0x488] sm:$0xff] }
 0x5b3   : > { %4408 = vmatprep.subr.mxu1 %v1793_v3 }
 0x5b4   : > { %4409 = vmatpush3.msra.mxu1 %v1793_v3  ;;  %v1961_v3 = vld [vmem:[#allocation4 + $0x480] sm:$0xff] }
 0x5b5   : > { %4410 = vmatprep.subr.mxu1 %v1792_v4 }
 0x5b6   : > { %4411 = vmatpush3.msra.mxu1 %v1792_v4  ;;  %v2147_v4 = vld [vmem:[#allocation4 + $0x510] sm:$0xff] }
 0x5b7   : > { %4412 = vmatprep.subr.mxu1 %v1791_v5 }
 0x5b8   : > { %4413 = vmatpush3.msra.mxu1 %v1791_v5  ;;  %v2146_v5 = vld [vmem:[#allocation4 + $0x508] sm:$0xff] }
 0x5b9   : > { %4414 = vmatprep.subr.mxu1 %v1790_v6 }
 0x5ba   : > { %4415 = vmatpush3.msra.mxu1 %v1790_v6  ;;  %v2145_v6 = vld [vmem:[#allocation4 + $0x500] sm:$0xff] }
 0x5bb   : > { %4416 = vmatprep.subr.mxu1 %v1789_v7 }
 0x5bc   : > { %4417 = vmatpush3.msra.mxu1 %v1789_v7 }
 0x5bd   : > { %4418 = vmatprep.subr.mxu1 %v1788_v8 }
 0x5be   : > { %4419 = vmatpush3.msra.mxu1 %v1788_v8 }
 0x5bf   : > { %4420 = vmatprep.subr.mxu1 %v1787_v9 }
 0x5c0   : > { %4421 = vmatpush3.msra.mxu1 %v1787_v9 }
 0x5c1   : > { %4422 = vmatprep.subr.mxu1 %v1786_v10 }
 0x5c2   : > { %4423 = vmatpush3.msra.mxu1 %v1786_v10 }
 0x5c3   : > { %4424 = vmatprep.subr.mxu1 %v1785_v11 }
 0x5c4   : > { %4425 = vmatpush3.msra.mxu1 %v1785_v11  ;;  %v2239_v11 = vld [vmem:[#allocation2 + $0xb0] sm:$0xff] }
 0x5c5   : > { %4426 = vmatprep.subr.mxu1 %v1784_v12 }
 0x5c6   : > { %4427 = vmatpush3.msra.mxu1 %v1784_v12  ;;  %v2240_v12 = vld [vmem:[#allocation2 + $0xb8] sm:$0xff] }
 0x5c7   : > { %4428 = vmatprep.subr.mxu1 %v1783_v13 }
 0x5c8   : > { %4429 = vmatpush3.msra.mxu1 %v1783_v13  ;;  %v2338_v13 = vld [vmem:[#allocation4 + $0x5f8] sm:$0xff] }
 0x5c9   : > { %4430 = vmatprep.subr.mxu1 %v1782_v14 }
 0x5ca   : > { %4431 = vmatpush3.msra.mxu1 %v1782_v14  ;;  %v2337_v14 = vld [vmem:[#allocation4 + $0x5f0] sm:$0xff] }
 0x5cb   : > { %4432 = vmatprep.subr.mxu1 %v1781_v15 }
 0x5cc   : > { %4433 = vmatpush3.msra.mxu1 %v1781_v15  ;;  %v2336_v15 = vld [vmem:[#allocation4 + $0x5e8] sm:$0xff] }
 0x5cd   : > { %4434 = vmatprep.subr.mxu1 %v1780_v16 }
 0x5ce   : > { %4435 = vmatpush3.msra.mxu1 %v1780_v16  ;;  %v2335_v16 = vld [vmem:[#allocation4 + $0x5e0] sm:$0xff] }
 0x5cf   : > { %4436 = vmatprep.subr.mxu1 %v1779_v17 }
 0x5d0   : > { %4437 = vmatpush3.msra.mxu1 %v1779_v17  ;;  %v2334_v17 = vld [vmem:[#allocation4 + $0x5d8] sm:$0xff] }
 0x66d   : > { %v4356_v18 = vpop.f32.mrf.mxu1 }
 0x66e   : > { %v4398_v25 = vpop.f32.mrf.mxu0  ;;  %v1515_v26 = vadd.f32 %v4356_v18, %v3635_v24  ;;  %v2333_v18 = vld [vmem:[#allocation4 + $0x5d0] sm:$0xff] }
 0x66f   : > { %v1499_v19 = vpop.f32.mrf.mxu1 }
 0x670   : > { %v1514_v27 = vadd.f32 %v3635_v24, %v1499_v19  ;;  %v1683_v28 = vpop.f32.mrf.mxu0  ;;  %v1693_v29 = vadd.f32 %v4398_v25, %v1515_v26  ;;  %v2332_v19 = vld [vmem:[#allocation4 + $0x5c8] sm:$0xff]  ;;  %v2327_v24 = vld [vmem:[#allocation4 + $0x5a0] sm:$0xff]  ;;  %v2326_v25 = vld [vmem:[#allocation4 + $0x598] sm:$0xff] }
 0x671   : > { %v4405_v20 = vpop.f32.mrf.mxu1  ;;  %v2325_v26 = vld [vmem:[#allocation4 + $0x590] sm:$0xff] }
 0x672   : > { %v1692_v31 = vadd.f32 %v1683_v28, %v1514_v27  ;;  %v2324_v27 = vld [vmem:[#allocation4 + $0x588] sm:$0xff]  ;;  %v2323_v28 = vld [vmem:[#allocation4 + $0x580] sm:$0xff] }
 0x673   : > { %v1769_v21 = vpop.f32.mrf.mxu1 }
 0x674   : > { %4438 = vmatprep.mubr.f32.mxu1 %v1769_v21  ;;  %v2330_v21 = vld [vmem:[#allocation4 + $0x5b8] sm:$0xff] }
 0x675   : > { %4439 = vmatmul.mubr.f32.vlgmr.msra.gmra.mxu1 %v4405_v20  ;;  %v2331_v20 = vld [vmem:[#allocation4 + $0x5c0] sm:$0xff] }
 0x676   : > { %4487 = vmatprep.mubr.msk.f32.mxu1 %vm247_vm0, %v2061_v23  ;;  %v2328_v23 = vld [vmem:[#allocation4 + $0x5a8] sm:$0xff] }
 0x735   : > { %v4440_v30 = vpop.f32.mrf.mxu1 }
 0x736   : > { %v1871_v32 = vadd.f32 %v4440_v30, %v1693_v29 }
 0x737   : > { %v1861_v33 = vpop.f32.mrf.mxu1 }
 0x738   : > { %v5147_v34 = vmax.f32 %v1871_v32, 0.0  ;;  %v1870_v35 = vadd.f32 %v1861_v33, %v1692_v31  ;;  %v2421_v33 = vld [vmem:[#allocation2 + $0xc0] sm:$0xff] }
 0x73a   : > { %v5149_v36 = vmax.f32 %v1870_v35, 0.0  ;;  %4441 = vmatprep.subr.mxu0 %v5147_v34  ;;  %4483 = vmatprep.subr.mxu1 %v5147_v34  ;;  %v3642_v35 = vld [vmem:[#allocation6 + $0x3] ss:$0 sm:$0xff] }
 0x73b   : > { %4442 = vmatpush3.msra.mxu0 %v5147_v34  ;;  %4484 = vmatpush3.msra.mxu1 %v5147_v34 }
 0x73c   : > { %4443 = vmatprep.subr.mxu0 %v5149_v36  ;;  %4485 = vmatprep.subr.mxu1 %v5149_v36 }
 0x73d   : > { %4444 = vmatpush3.msra.mxu0 %v5149_v36  ;;  %4486 = vmatpush3.msra.mxu1 %v5149_v36 }
 0x73e   : > { %4446 = vmatmul.mubr.msk.f32.vlgmr.msra.gmra.mxu0 %vm247_vm0, %v1878_v37  ;;  %4448 = vmatprep.subr.mxu0 %v1976_v38 }
 0x73f   : > { %4449 = vmatpush3.msra.mxu0 %v1976_v38  ;;  %4488 = vmatmul.mubr.msk.f32.vlgmr.msra.gmra.mxu1 %vm247_vm0, %v2062_v39 }
 0x740   : > { %4450 = vmatprep.subr.mxu0 %v1975_v40  ;;  %4490 = vmatprep.subr.mxu1 %v2160_v41 }
 0x741   : > { %4451 = vmatpush3.msra.mxu0 %v1975_v40  ;;  %4491 = vmatpush3.msra.mxu1 %v2160_v41 }
 0x742   : > { %4452 = vmatprep.subr.mxu0 %v1974_v42  ;;  %4492 = vmatprep.subr.mxu1 %v2159_v43 }
 0x743   : > { %4453 = vmatpush3.msra.mxu0 %v1974_v42  ;;  %4493 = vmatpush3.msra.mxu1 %v2159_v43 }
 0x744   : > { %4454 = vmatprep.subr.mxu0 %v1973_v44  ;;  %4494 = vmatprep.subr.mxu1 %v2158_v45 }
 0x745   : > { %4455 = vmatpush3.msra.mxu0 %v1973_v44  ;;  %4495 = vmatpush3.msra.mxu1 %v2158_v45 }
 0x746   : > { %4456 = vmatprep.subr.mxu0 %v1972_v46  ;;  %4496 = vmatprep.subr.mxu1 %v2157_v47 }
 0x747   : > { %4457 = vmatpush3.msra.mxu0 %v1972_v46  ;;  %4497 = vmatpush3.msra.mxu1 %v2157_v47 }
 0x748   : > { %4458 = vmatprep.subr.mxu0 %v1971_v48  ;;  %4498 = vmatprep.subr.mxu1 %v2156_v49 }
 0x749   : > { %4459 = vmatpush3.msra.mxu0 %v1971_v48  ;;  %4499 = vmatpush3.msra.mxu1 %v2156_v49  ;;  %v2422_v48 = vld [vmem:[#allocation2 + $0xc8] sm:$0xff]  ;;  %v2520_v49 = vld [vmem:[#allocation4 + $0x678] sm:$0xff] }
 0x74a   : > { %4460 = vmatprep.subr.mxu0 %v1970_v50  ;;  %4500 = vmatprep.subr.mxu1 %v2155_v51 }
 0x74b   : > { %4461 = vmatpush3.msra.mxu0 %v1970_v50  ;;  %4501 = vmatpush3.msra.mxu1 %v2155_v51  ;;  %v2606_v50 = vld [vmem:[#allocation2 + $0xd8] sm:$0xff]  ;;  %v2519_v51 = vld [vmem:[#allocation4 + $0x670] sm:$0xff] }
 0x74c   : > { %4462 = vmatprep.subr.mxu0 %v1969_v52  ;;  %4502 = vmatprep.subr.mxu1 %v2154_v53 }
 0x74d   : > { %4463 = vmatpush3.msra.mxu0 %v1969_v52  ;;  %4503 = vmatpush3.msra.mxu1 %v2154_v53  ;;  %v2704_v52 = vld [vmem:[#allocation4 + $0x6f8] sm:$0xff]  ;;  %v2518_v53 = vld [vmem:[#allocation4 + $0x668] sm:$0xff] }
 0x74e   : > { %4464 = vmatprep.subr.mxu0 %v1968_v54  ;;  %4504 = vmatprep.subr.mxu1 %v2153_v55 }
 0x74f   : > { %4465 = vmatpush3.msra.mxu0 %v1968_v54  ;;  %4505 = vmatpush3.msra.mxu1 %v2153_v55  ;;  %v2703_v54 = vld [vmem:[#allocation4 + $0x6f0] sm:$0xff]  ;;  %v2517_v55 = vld [vmem:[#allocation4 + $0x660] sm:$0xff] }
 0x750   : > { %4466 = vmatprep.subr.mxu0 %v1967_v56  ;;  %4506 = vmatprep.subr.mxu1 %v2152_v57 }
 0x751   : > { %4467 = vmatpush3.msra.mxu0 %v1967_v56  ;;  %4507 = vmatpush3.msra.mxu1 %v2152_v57  ;;  %v2702_v56 = vld [vmem:[#allocation4 + $0x6e8] sm:$0xff]  ;;  %v2516_v57 = vld [vmem:[#allocation4 + $0x658] sm:$0xff] }
 0x752   : > { %4468 = vmatprep.subr.mxu0 %v1966_v58  ;;  %4508 = vmatprep.subr.mxu1 %v2151_v59 }
 0x753   : > { %4469 = vmatpush3.msra.mxu0 %v1966_v58  ;;  %4509 = vmatpush3.msra.mxu1 %v2151_v59  ;;  %v2701_v58 = vld [vmem:[#allocation4 + $0x6e0] sm:$0xff]  ;;  %v2515_v59 = vld [vmem:[#allocation4 + $0x650] sm:$0xff] }
 0x754   : > { %4470 = vmatprep.subr.mxu0 %v1965_v60  ;;  %4510 = vmatprep.subr.mxu1 %v2150_v61 }
 0x755   : > { %4471 = vmatpush3.msra.mxu0 %v1965_v60  ;;  %4511 = vmatpush3.msra.mxu1 %v2150_v61  ;;  %v2700_v60 = vld [vmem:[#allocation4 + $0x6d8] sm:$0xff]  ;;  %v2514_v61 = vld [vmem:[#allocation4 + $0x648] sm:$0xff] }
 0x756   : > { %4472 = vmatprep.subr.mxu0 %v1964_v62  ;;  %4512 = vmatprep.subr.mxu1 %v2149_v63 }
 0x757   : > { %4473 = vmatpush3.msra.mxu0 %v1964_v62  ;;  %4513 = vmatpush3.msra.mxu1 %v2149_v63  ;;  %v2699_v62 = vld [vmem:[#allocation4 + $0x6d0] sm:$0xff]  ;;  %v2513_v63 = vld [vmem:[#allocation4 + $0x640] sm:$0xff] }
 0x758   : > { %4474 = vmatprep.subr.mxu0 %v1963_v0  ;;  %4514 = vmatprep.subr.mxu1 %v2148_v1 }
 0x759   : > { %4475 = vmatpush3.msra.mxu0 %v1963_v0  ;;  %4515 = vmatpush3.msra.mxu1 %v2148_v1  ;;  %v2698_v0 = vld [vmem:[#allocation4 + $0x6c8] sm:$0xff]  ;;  %v2512_v1 = vld [vmem:[#allocation4 + $0x638] sm:$0xff] }
 0x75a   : > { %4476 = vmatprep.subr.mxu0 %v1962_v2  ;;  %4516 = vmatprep.subr.mxu1 %v2147_v4 }
 0x75b   : > { %4477 = vmatpush3.msra.mxu0 %v1962_v2  ;;  %4517 = vmatpush3.msra.mxu1 %v2147_v4  ;;  %v2697_v2 = vld [vmem:[#allocation4 + $0x6c0] sm:$0xff]  ;;  %v2696_v4 = vld [vmem:[#allocation4 + $0x6b8] sm:$0xff] }
 0x75c   : > { %4478 = vmatprep.subr.mxu0 %v1961_v3  ;;  %4518 = vmatprep.subr.mxu1 %v2146_v5 }
 0x75d   : > { %4479 = vmatpush3.msra.mxu0 %v1961_v3  ;;  %4519 = vmatpush3.msra.mxu1 %v2146_v5  ;;  %v2511_v3 = vld [vmem:[#allocation4 + $0x630] sm:$0xff]  ;;  %v2510_v5 = vld [vmem:[#allocation4 + $0x628] sm:$0xff] }
 0x75e   : > { %4525 = vmatprep.subr.mxu0 %v5147_v34  ;;  %4520 = vmatprep.subr.mxu1 %v2145_v6 }
 0x75f   : > { %4521 = vmatpush3.msra.mxu1 %v2145_v6  ;;  %v2695_v6 = vld [vmem:[#allocation4 + $0x6b0] sm:$0xff] }
 0x7fe   : > { %v4447_v7 = vpop.f32.mrf.mxu0 }
 0x7ff   : > { %v4489_v8 = vpop.f32.mrf.mxu1 }
 0x800   : > { %v1951_v9 = vpop.f32.mrf.mxu0 }
 0x801   : > { %4480 = vmatprep.mubr.f32.mxu0 %v1951_v9  ;;  %v2135_v10 = vpop.f32.mrf.mxu1  ;;  %v2508_v9 = vld [vmem:[#allocation4 + $0x618] sm:$0xff] }
 0x802   : > { %4481 = vmatmul.mubr.f32.vlgmr.msra.gmra.mxu0 %v4447_v7  ;;  %4522 = vmatprep.mubr.f32.mxu1 %v2135_v10  ;;  %v2509_v7 = vld [vmem:[#allocation4 + $0x620] sm:$0xff] }
 0x803   : > { %4526 = vmatpush3.msra.mxu0 %v5147_v34  ;;  %4523 = vmatmul.mubr.f32.vlgmr.msra.gmra.mxu1 %v4489_v8  ;;  %v2605_v34 = vld [vmem:[#allocation2 + $0xd0] sm:$0xff]  ;;  %v2694_v8 = vld [vmem:[#allocation4 + $0x6a8] sm:$0xff]  ;;  %v2693_v10 = vld [vmem:[#allocation4 + $0x6a0] sm:$0xff] }
 0x804   : > { %4527 = vmatprep.subr.mxu0 %v5149_v36  ;;  %4529 = vmatprep.mubr.msk.f32.mxu0 %vm247_vm0, %v2239_v11  ;;  %v2507_v11 = vld [vmem:[#allocation4 + $0x610] sm:$0xff] }
 0x805   : > { %4528 = vmatpush3.msra.mxu0 %v5149_v36  ;;  %4571 = vmatprep.mubr.msk.f32.mxu1 %vm247_vm0, %v2421_v33  ;;  %v2873_v33 = vld [vmem:[#allocation4 + $0x730] sm:$0xff] }
 0x806   : > { %4530 = vmatmul.mubr.msk.f32.vlgmr.msra.gmra.mxu0 %vm247_vm0, %v2240_v12  ;;  %4532 = vmatprep.subr.mxu0 %v2338_v13  ;;  %v2692_v12 = vld [vmem:[#allocation4 + $0x698] sm:$0xff] }
 0x807   : > { %4533 = vmatpush3.msra.mxu0 %v2338_v13  ;;  %v2506_v13 = vld [vmem:[#allocation4 + $0x608] sm:$0xff] }
 0x808   : > { %4534 = vmatprep.subr.mxu0 %v2337_v14 }
 0x809   : > { %4535 = vmatpush3.msra.mxu0 %v2337_v14  ;;  %v2505_v14 = vld [vmem:[#allocation4 + $0x600] sm:$0xff] }
 0x80a   : > { %4536 = vmatprep.subr.mxu0 %v2336_v15 }
 0x80b   : > { %4537 = vmatpush3.msra.mxu0 %v2336_v15  ;;  %v2691_v15 = vld [vmem:[#allocation4 + $0x690] sm:$0xff] }
 0x80c   : > { %4538 = vmatprep.subr.mxu0 %v2335_v16 }
 0x80d   : > { %4539 = vmatpush3.msra.mxu0 %v2335_v16  ;;  %v2690_v16 = vld [vmem:[#allocation4 + $0x688] sm:$0xff] }
 0x80e   : > { %4540 = vmatprep.subr.mxu0 %v2334_v17 }
 0x80f   : > { %4541 = vmatpush3.msra.mxu0 %v2334_v17  ;;  %v2689_v17 = vld [vmem:[#allocation4 + $0x680] sm:$0xff] }
 0x810   : > { %4542 = vmatprep.subr.mxu0 %v2333_v18 }
 0x811   : > { %4543 = vmatpush3.msra.mxu0 %v2333_v18 }
 0x812   : > { %4544 = vmatprep.subr.mxu0 %v2332_v19 }
 0x813   : > { %4545 = vmatpush3.msra.mxu0 %v2332_v19 }
 0x814   : > { %4546 = vmatprep.subr.mxu0 %v2331_v20 }
 0x815   : > { %4547 = vmatpush3.msra.mxu0 %v2331_v20 }
 0x816   : > { %4548 = vmatprep.subr.mxu0 %v2330_v21 }
 0x817   : > { %4549 = vmatpush3.msra.mxu0 %v2330_v21 }
 0x818   : > { %4550 = vmatprep.subr.mxu0 %v2329_v22 }
 0x819   : > { %4551 = vmatpush3.msra.mxu0 %v2329_v22  ;;  %v2783_v22 = vld [vmem:[#allocation2 + $0xe0] sm:$0xff] }
 0x81a   : > { %4552 = vmatprep.subr.mxu0 %v2328_v23 }
 0x81b   : > { %4553 = vmatpush3.msra.mxu0 %v2328_v23  ;;  %v2784_v23 = vld [vmem:[#allocation2 + $0xe8] sm:$0xff] }
 0x81c   : > { %4554 = vmatprep.subr.mxu0 %v2327_v24 }
 0x81d   : > { %4555 = vmatpush3.msra.mxu0 %v2327_v24  ;;  %v2882_v24 = vld [vmem:[#allocation4 + $0x778] sm:$0xff] }
 0x81e   : > { %4556 = vmatprep.subr.mxu0 %v2326_v25 }
 0x81f   : > { %4557 = vmatpush3.msra.mxu0 %v2326_v25  ;;  %v2881_v25 = vld [vmem:[#allocation4 + $0x770] sm:$0xff] }
 0x820   : > { %4558 = vmatprep.subr.mxu0 %v2325_v26 }
 0x821   : > { %4559 = vmatpush3.msra.mxu0 %v2325_v26  ;;  %v2880_v26 = vld [vmem:[#allocation4 + $0x768] sm:$0xff] }
 0x822   : > { %4560 = vmatprep.subr.mxu0 %v2324_v27 }
 0x823   : > { %4561 = vmatpush3.msra.mxu0 %v2324_v27  ;;  %v2879_v27 = vld [vmem:[#allocation4 + $0x760] sm:$0xff] }
 0x824   : > { %4562 = vmatprep.subr.mxu0 %v2323_v28 }
 0x825   : > { %4563 = vmatpush3.msra.mxu0 %v2323_v28  ;;  %v2878_v28 = vld [vmem:[#allocation4 + $0x758] sm:$0xff] }
 0x8c2   : > { %v4482_v29 = vpop.f32.mrf.mxu0 }
 0x8c3   : > { %v4524_v36 = vpop.f32.mrf.mxu1  ;;  %v2059_v37 = vadd.f32 %v4482_v29, %v3642_v35  ;;  %v2877_v29 = vld [vmem:[#allocation4 + $0x750] sm:$0xff] }
 0x8c4   : > { %v2043_v30 = vpop.f32.mrf.mxu0 }
 0x8c5   : > { %v2058_v38 = vadd.f32 %v3642_v35, %v2043_v30  ;;  %v2227_v39 = vpop.f32.mrf.mxu1  ;;  %v2237_v40 = vadd.f32 %v4524_v36, %v2059_v37  ;;  %v2876_v30 = vld [vmem:[#allocation4 + $0x748] sm:$0xff]  ;;  %v2871_v35 = vld [vmem:[#allocation4 + $0x720] sm:$0xff]  ;;  %v2870_v36 = vld [vmem:[#allocation4 + $0x718] sm:$0xff] }
 0x8c6   : > { %v4531_v31 = vpop.f32.mrf.mxu0  ;;  %v2869_v37 = vld [vmem:[#allocation4 + $0x710] sm:$0xff] }
 0x8c7   : > { %v2236_v42 = vadd.f32 %v2227_v39, %v2058_v38  ;;  %v2868_v38 = vld [vmem:[#allocation4 + $0x708] sm:$0xff]  ;;  %v2867_v39 = vld [vmem:[#allocation4 + $0x700] sm:$0xff] }
 0x8c8   : > { %v2313_v32 = vpop.f32.mrf.mxu0 }
 0x8c9   : > { %4564 = vmatprep.mubr.f32.mxu0 %v2313_v32  ;;  %v2874_v32 = vld [vmem:[#allocation4 + $0x738] sm:$0xff] }
 0x8ca   : > { %4565 = vmatmul.mubr.f32.vlgmr.msra.gmra.mxu0 %v4531_v31  ;;  %v2875_v31 = vld [vmem:[#allocation4 + $0x740] sm:$0xff] }
 0x8cb   : > { %4613 = vmatprep.mubr.msk.f32.mxu0 %vm247_vm0, %v2605_v34  ;;  %v2872_v34 = vld [vmem:[#allocation4 + $0x728] sm:$0xff] }
 0x98a   : > { %v4566_v41 = vpop.f32.mrf.mxu0 }
 0x98b   : > { %v2415_v43 = vadd.f32 %v4566_v41, %v2237_v40 }
 0x98c   : > { %v2405_v44 = vpop.f32.mrf.mxu0 }
 0x98d   : > { %v5169_v45 = vmax.f32 %v2415_v43, 0.0  ;;  %v2414_v46 = vadd.f32 %v2405_v44, %v2236_v42  ;;  %v2965_v44 = vld [vmem:[#allocation2 + $0xf0] sm:$0xff] }
 0x98f   : > { %v5171_v47 = vmax.f32 %v2414_v46, 0.0  ;;  %4567 = vmatprep.subr.mxu1 %v5169_v45  ;;  %4609 = vmatprep.subr.mxu0 %v5169_v45  ;;  %v3649_v46 = vld [vmem:[#allocation6 + $0x4] ss:$0 sm:$0xff] }
 0x990   : > { %4568 = vmatpush3.msra.mxu1 %v5169_v45  ;;  %4610 = vmatpush3.msra.mxu0 %v5169_v45 }
 0x991   : > { %4569 = vmatprep.subr.mxu1 %v5171_v47  ;;  %4611 = vmatprep.subr.mxu0 %v5171_v47 }
 0x992   : > { %4570 = vmatpush3.msra.mxu1 %v5171_v47  ;;  %4612 = vmatpush3.msra.mxu0 %v5171_v47 }
 0x993   : > { %4572 = vmatmul.mubr.msk.f32.vlgmr.msra.gmra.mxu1 %vm247_vm0, %v2422_v48  ;;  %4574 = vmatprep.subr.mxu1 %v2520_v49 }
 0x994   : > { %4575 = vmatpush3.msra.mxu1 %v2520_v49  ;;  %4614 = vmatmul.mubr.msk.f32.vlgmr.msra.gmra.mxu0 %vm247_vm0, %v2606_v50 }
 0x995   : > { %4576 = vmatprep.subr.mxu1 %v2519_v51  ;;  %4616 = vmatprep.subr.mxu0 %v2704_v52 }
 0x996   : > { %4577 = vmatpush3.msra.mxu1 %v2519_v51  ;;  %4617 = vmatpush3.msra.mxu0 %v2704_v52 }
 0x997   : > { %4578 = vmatprep.subr.mxu1 %v2518_v53  ;;  %4618 = vmatprep.subr.mxu0 %v2703_v54 }
 0x998   : > { %4579 = vmatpush3.msra.mxu1 %v2518_v53  ;;  %4619 = vmatpush3.msra.mxu0 %v2703_v54 }
 0x999   : > { %4580 = vmatprep.subr.mxu1 %v2517_v55  ;;  %4620 = vmatprep.subr.mxu0 %v2702_v56 }
 0x99a   : > { %4581 = vmatpush3.msra.mxu1 %v2517_v55  ;;  %4621 = vmatpush3.msra.mxu0 %v2702_v56 }
 0x99b   : > { %4582 = vmatprep.subr.mxu1 %v2516_v57  ;;  %4622 = vmatprep.subr.mxu0 %v2701_v58 }
 0x99c   : > { %4583 = vmatpush3.msra.mxu1 %v2516_v57  ;;  %4623 = vmatpush3.msra.mxu0 %v2701_v58 }
 0x99d   : > { %4584 = vmatprep.subr.mxu1 %v2515_v59  ;;  %4624 = vmatprep.subr.mxu0 %v2700_v60 }
 0x99e   : > { %4585 = vmatpush3.msra.mxu1 %v2515_v59  ;;  %4625 = vmatpush3.msra.mxu0 %v2700_v60  ;;  %v2966_v59 = vld [vmem:[#allocation2 + $0xf8] sm:$0xff] }
 0x99f   : > { %4586 = vmatprep.subr.mxu1 %v2514_v61  ;;  %4626 = vmatprep.subr.mxu0 %v2699_v62  ;;  %v3064_v60 = vld [vmem:[#allocation4 + $0x7f8] sm:$0xff] }
 0x9a0   : > { %4587 = vmatpush3.msra.mxu1 %v2514_v61  ;;  %4627 = vmatpush3.msra.mxu0 %v2699_v62  ;;  %v3150_v61 = vld [vmem:[#allocation2 + $0x108] sm:$0xff]  ;;  %v3063_v62 = vld [vmem:[#allocation4 + $0x7f0] sm:$0xff] }
 0x9a1   : > { %4588 = vmatprep.subr.mxu1 %v2513_v63  ;;  %4628 = vmatprep.subr.mxu0 %v2698_v0 }
 0x9a2   : > { %4589 = vmatpush3.msra.mxu1 %v2513_v63  ;;  %4629 = vmatpush3.msra.mxu0 %v2698_v0  ;;  %v3248_v63 = vld [vmem:[#allocation4 + $0x878] sm:$0xff]  ;;  %v3062_v0 = vld [vmem:[#allocation4 + $0x7e8] sm:$0xff] }
 0x9a3   : > { %4590 = vmatprep.subr.mxu1 %v2512_v1  ;;  %4630 = vmatprep.subr.mxu0 %v2697_v2 }
 0x9a4   : > { %4591 = vmatpush3.msra.mxu1 %v2512_v1  ;;  %4631 = vmatpush3.msra.mxu0 %v2697_v2  ;;  %v3247_v1 = vld [vmem:[#allocation4 + $0x870] sm:$0xff]  ;;  %v3061_v2 = vld [vmem:[#allocation4 + $0x7e0] sm:$0xff] }
 0x9a5   : > { %4592 = vmatprep.subr.mxu1 %v2511_v3  ;;  %4632 = vmatprep.subr.mxu0 %v2696_v4 }
 0x9a6   : > { %4593 = vmatpush3.msra.mxu1 %v2511_v3  ;;  %4633 = vmatpush3.msra.mxu0 %v2696_v4  ;;  %v3246_v3 = vld [vmem:[#allocation4 + $0x868] sm:$0xff]  ;;  %v3060_v4 = vld [vmem:[#allocation4 + $0x7d8] sm:$0xff] }
 0x9a7   : > { %4594 = vmatprep.subr.mxu1 %v2510_v5  ;;  %4634 = vmatprep.subr.mxu0 %v2695_v6 }
 0x9a8   : > { %4595 = vmatpush3.msra.mxu1 %v2510_v5  ;;  %4635 = vmatpush3.msra.mxu0 %v2695_v6  ;;  %v3245_v5 = vld [vmem:[#allocation4 + $0x860] sm:$0xff]  ;;  %v3059_v6 = vld [vmem:[#allocation4 + $0x7d0] sm:$0xff] }
 0x9a9   : > { %4596 = vmatprep.subr.mxu1 %v2509_v7  ;;  %4636 = vmatprep.subr.mxu0 %v2694_v8 }
 0x9aa   : > { %4597 = vmatpush3.msra.mxu1 %v2509_v7  ;;  %4637 = vmatpush3.msra.mxu0 %v2694_v8  ;;  %v3244_v7 = vld [vmem:[#allocation4 + $0x858] sm:$0xff]  ;;  %v3058_v8 = vld [vmem:[#allocation4 + $0x7c8] sm:$0xff] }
 0x9ab   : > { %4598 = vmatprep.subr.mxu1 %v2508_v9  ;;  %4638 = vmatprep.subr.mxu0 %v2693_v10 }
 0x9ac   : > { %4599 = vmatpush3.msra.mxu1 %v2508_v9  ;;  %4639 = vmatpush3.msra.mxu0 %v2693_v10  ;;  %v3243_v9 = vld [vmem:[#allocation4 + $0x850] sm:$0xff]  ;;  %v3057_v10 = vld [vmem:[#allocation4 + $0x7c0] sm:$0xff] }
 0x9ad   : > { %4600 = vmatprep.subr.mxu1 %v2507_v11  ;;  %4640 = vmatprep.subr.mxu0 %v2692_v12 }
 0x9ae   : > { %4601 = vmatpush3.msra.mxu1 %v2507_v11  ;;  %4641 = vmatpush3.msra.mxu0 %v2692_v12  ;;  %v3242_v11 = vld [vmem:[#allocation4 + $0x848] sm:$0xff]  ;;  %v3056_v12 = vld [vmem:[#allocation4 + $0x7b8] sm:$0xff] }
 0x9af   : > { %4602 = vmatprep.subr.mxu1 %v2506_v13  ;;  %4642 = vmatprep.subr.mxu0 %v2691_v15 }
 0x9b0   : > { %4603 = vmatpush3.msra.mxu1 %v2506_v13  ;;  %4643 = vmatpush3.msra.mxu0 %v2691_v15  ;;  %v3241_v13 = vld [vmem:[#allocation4 + $0x840] sm:$0xff]  ;;  %v3240_v15 = vld [vmem:[#allocation4 + $0x838] sm:$0xff] }
 0x9b1   : > { %4604 = vmatprep.subr.mxu1 %v2505_v14  ;;  %4644 = vmatprep.subr.mxu0 %v2690_v16 }
 0x9b2   : > { %4605 = vmatpush3.msra.mxu1 %v2505_v14  ;;  %4645 = vmatpush3.msra.mxu0 %v2690_v16  ;;  %v3055_v14 = vld [vmem:[#allocation4 + $0x7b0] sm:$0xff]  ;;  %v3054_v16 = vld [vmem:[#allocation4 + $0x7a8] sm:$0xff] }
 0x9b3   : > { %4651 = vmatprep.subr.mxu1 %v5169_v45  ;;  %4646 = vmatprep.subr.mxu0 %v2689_v17 }
 0x9b4   : > { %4647 = vmatpush3.msra.mxu0 %v2689_v17  ;;  %v3239_v17 = vld [vmem:[#allocation4 + $0x830] sm:$0xff] }
 0xa53   : > { %v4573_v18 = vpop.f32.mrf.mxu1 }
 0xa54   : > { %v4615_v19 = vpop.f32.mrf.mxu0 }
 0xa55   : > { %v2495_v20 = vpop.f32.mrf.mxu1 }
 0xa56   : > { %4606 = vmatprep.mubr.f32.mxu1 %v2495_v20  ;;  %v2679_v21 = vpop.f32.mrf.mxu0  ;;  %v3052_v20 = vld [vmem:[#allocation4 + $0x798] sm:$0xff] }
 0xa57   : > { %4607 = vmatmul.mubr.f32.vlgmr.msra.gmra.mxu1 %v4573_v18  ;;  %4648 = vmatprep.mubr.f32.mxu0 %v2679_v21  ;;  %v3053_v18 = vld [vmem:[#allocation4 + $0x7a0] sm:$0xff] }
 0xa58   : > { %4652 = vmatpush3.msra.mxu1 %v5169_v45  ;;  %4649 = vmatmul.mubr.f32.vlgmr.msra.gmra.mxu0 %v4615_v19  ;;  %v3149_v45 = vld [vmem:[#allocation2 + $0x100] sm:$0xff]  ;;  %v3238_v19 = vld [vmem:[#allocation4 + $0x828] sm:$0xff] }
 0xa59   : > { %4653 = vmatprep.subr.mxu1 %v5171_v47  ;;  %4655 = vmatprep.mubr.msk.f32.mxu1 %vm247_vm0, %v2783_v22  ;;  %v3237_v21 = vld [vmem:[#allocation4 + $0x820] sm:$0xff]  ;;  %v3051_v22 = vld [vmem:[#allocation4 + $0x790] sm:$0xff] }
 0xa5a   : > { %4654 = vmatpush3.msra.mxu1 %v5171_v47  ;;  %4697 = vmatprep.mubr.msk.f32.mxu0 %vm247_vm0, %v2965_v44  ;;  %v3417_v44 = vld [vmem:[#allocation4 + $0x8b0] sm:$0xff] }
 0xa5b   : > { %4656 = vmatmul.mubr.msk.f32.vlgmr.msra.gmra.mxu1 %vm247_vm0, %v2784_v23  ;;  %4658 = vmatprep.subr.mxu1 %v2882_v24  ;;  %v3236_v23 = vld [vmem:[#allocation4 + $0x818] sm:$0xff] }
 0xa5c   : > { %4659 = vmatpush3.msra.mxu1 %v2882_v24  ;;  %v3050_v24 = vld [vmem:[#allocation4 + $0x788] sm:$0xff] }
 0xa5d   : > { %4660 = vmatprep.subr.mxu1 %v2881_v25 }
 0xa5e   : > { %4661 = vmatpush3.msra.mxu1 %v2881_v25  ;;  %v3049_v25 = vld [vmem:[#allocation4 + $0x780] sm:$0xff] }
 0xa5f   : > { %4662 = vmatprep.subr.mxu1 %v2880_v26 }
 0xa60   : > { %4663 = vmatpush3.msra.mxu1 %v2880_v26  ;;  %v3235_v26 = vld [vmem:[#allocation4 + $0x810] sm:$0xff] }
 0xa61   : > { %4664 = vmatprep.subr.mxu1 %v2879_v27 }
 0xa62   : > { %4665 = vmatpush3.msra.mxu1 %v2879_v27  ;;  %v3234_v27 = vld [vmem:[#allocation4 + $0x808] sm:$0xff] }
 0xa63   : > { %4666 = vmatprep.subr.mxu1 %v2878_v28 }
 0xa64   : > { %4667 = vmatpush3.msra.mxu1 %v2878_v28  ;;  %v3233_v28 = vld [vmem:[#allocation4 + $0x800] sm:$0xff] }
 0xa65   : > { %4668 = vmatprep.subr.mxu1 %v2877_v29 }
 0xa66   : > { %4669 = vmatpush3.msra.mxu1 %v2877_v29 }
 0xa67   : > { %4670 = vmatprep.subr.mxu1 %v2876_v30 }
 0xa68   : > { %4671 = vmatpush3.msra.mxu1 %v2876_v30 }
 0xa69   : > { %4672 = vmatprep.subr.mxu1 %v2875_v31 }
 0xa6a   : > { %4673 = vmatpush3.msra.mxu1 %v2875_v31 }
 0xa6b   : > { %4674 = vmatprep.subr.mxu1 %v2874_v32 }
 0xa6c   : > { %4675 = vmatpush3.msra.mxu1 %v2874_v32 }
 0xa6d   : > { %4676 = vmatprep.subr.mxu1 %v2873_v33 }
 0xa6e   : > { %4677 = vmatpush3.msra.mxu1 %v2873_v33  ;;  %v3327_v33 = vld [vmem:[#allocation2 + $0x110] sm:$0xff] }
 0xa6f   : > { %4678 = vmatprep.subr.mxu1 %v2872_v34 }
 0xa70   : > { %4679 = vmatpush3.msra.mxu1 %v2872_v34  ;;  %v3328_v34 = vld [vmem:[#allocation2 + $0x118] sm:$0xff] }
 0xa71   : > { %4680 = vmatprep.subr.mxu1 %v2871_v35 }
 0xa72   : > { %4681 = vmatpush3.msra.mxu1 %v2871_v35  ;;  %v3426_v35 = vld [vmem:[#allocation4 + $0x8f8] sm:$0xff] }
 0xa73   : > { %4682 = vmatprep.subr.mxu1 %v2870_v36 }
 0xa74   : > { %4683 = vmatpush3.msra.mxu1 %v2870_v36  ;;  %v3425_v36 = vld [vmem:[#allocation4 + $0x8f0] sm:$0xff] }
 0xa75   : > { %4684 = vmatprep.subr.mxu1 %v2869_v37 }
 0xa76   : > { %4685 = vmatpush3.msra.mxu1 %v2869_v37  ;;  %v3424_v37 = vld [vmem:[#allocation4 + $0x8e8] sm:$0xff] }
 0xa77   : > { %4686 = vmatprep.subr.mxu1 %v2868_v38 }
 0xa78   : > { %4687 = vmatpush3.msra.mxu1 %v2868_v38  ;;  %v3423_v38 = vld [vmem:[#allocation4 + $0x8e0] sm:$0xff] }
 0xa79   : > { %4688 = vmatprep.subr.mxu1 %v2867_v39 }
 0xa7a   : > { %4689 = vmatpush3.msra.mxu1 %v2867_v39  ;;  %v3422_v39 = vld [vmem:[#allocation4 + $0x8d8] sm:$0xff] }
 0xb17   : > { %v4608_v40 = vpop.f32.mrf.mxu1 }
 0xb18   : > { %v4650_v47 = vpop.f32.mrf.mxu0  ;;  %v2603_v48 = vadd.f32 %v4608_v40, %v3649_v46  ;;  %v3421_v40 = vld [vmem:[#allocation4 + $0x8d0] sm:$0xff] }
 0xb19   : > { %v2587_v41 = vpop.f32.mrf.mxu1 }
 0xb1a   : > { %v2602_v49 = vadd.f32 %v3649_v46, %v2587_v41  ;;  %v2771_v50 = vpop.f32.mrf.mxu0  ;;  %v2781_v51 = vadd.f32 %v4650_v47, %v2603_v48  ;;  %v3420_v41 = vld [vmem:[#allocation4 + $0x8c8] sm:$0xff]  ;;  %v3415_v46 = vld [vmem:[#allocation4 + $0x8a0] sm:$0xff]  ;;  %v3414_v47 = vld [vmem:[#allocation4 + $0x898] sm:$0xff] }
 0xb1b   : > { %v4657_v42 = vpop.f32.mrf.mxu1  ;;  %v3413_v48 = vld [vmem:[#allocation4 + $0x890] sm:$0xff] }
 0xb1c   : > { %v2780_v53 = vadd.f32 %v2771_v50, %v2602_v49  ;;  %v3412_v49 = vld [vmem:[#allocation4 + $0x888] sm:$0xff]  ;;  %v3411_v50 = vld [vmem:[#allocation4 + $0x880] sm:$0xff] }
 0xb1d   : > { %v2857_v43 = vpop.f32.mrf.mxu1 }
 0xb1e   : > { %4690 = vmatprep.mubr.f32.mxu1 %v2857_v43  ;;  %v3418_v43 = vld [vmem:[#allocation4 + $0x8b8] sm:$0xff] }
 0xb1f   : > { %4691 = vmatmul.mubr.f32.vlgmr.msra.gmra.mxu1 %v4657_v42  ;;  %v3419_v42 = vld [vmem:[#allocation4 + $0x8c0] sm:$0xff] }
 0xb20   : > { %4739 = vmatprep.mubr.msk.f32.mxu1 %vm247_vm0, %v3149_v45  ;;  %v3416_v45 = vld [vmem:[#allocation4 + $0x8a8] sm:$0xff] }
 0xbdf   : > { %v4692_v52 = vpop.f32.mrf.mxu1 }
 0xbe0   : > { %v2959_v54 = vadd.f32 %v4692_v52, %v2781_v51 }
 0xbe1   : > { %v2949_v55 = vpop.f32.mrf.mxu1 }
 0xbe2   : > { %v5191_v56 = vmax.f32 %v2959_v54, 0.0  ;;  %v2958_v57 = vadd.f32 %v2949_v55, %v2780_v53  ;;  %v3656_v55 = vld [vmem:[#allocation6 + $0x5] ss:$0 sm:$0xff] }
 0xbe4   : > { %v5193_v58 = vmax.f32 %v2958_v57, 0.0  ;;  %4693 = vmatprep.subr.mxu0 %v5191_v56  ;;  %4735 = vmatprep.subr.mxu1 %v5191_v56 }
 0xbe5   : > { %4694 = vmatpush3.msra.mxu0 %v5191_v56  ;;  %4736 = vmatpush3.msra.mxu1 %v5191_v56 }
 0xbe6   : > { %4695 = vmatprep.subr.mxu0 %v5193_v58  ;;  %4737 = vmatprep.subr.mxu1 %v5193_v58 }
 0xbe7   : > { %4696 = vmatpush3.msra.mxu0 %v5193_v58  ;;  %4738 = vmatpush3.msra.mxu1 %v5193_v58 }
 0xbe8   : > { %4698 = vmatmul.mubr.msk.f32.vlgmr.msra.gmra.mxu0 %vm247_vm0, %v2966_v59  ;;  %4700 = vmatprep.subr.mxu0 %v3064_v60 }
 0xbe9   : > { %4701 = vmatpush3.msra.mxu0 %v3064_v60  ;;  %4740 = vmatmul.mubr.msk.f32.vlgmr.msra.gmra.mxu1 %vm247_vm0, %v3150_v61 }
 0xbea   : > { %4702 = vmatprep.subr.mxu0 %v3063_v62  ;;  %4742 = vmatprep.subr.mxu1 %v3248_v63 }
 0xbeb   : > { %4703 = vmatpush3.msra.mxu0 %v3063_v62  ;;  %4743 = vmatpush3.msra.mxu1 %v3248_v63 }
 0xbec   : > { %4704 = vmatprep.subr.mxu0 %v3062_v0  ;;  %4744 = vmatprep.subr.mxu1 %v3247_v1 }
 0xbed   : > { %4705 = vmatpush3.msra.mxu0 %v3062_v0  ;;  %4745 = vmatpush3.msra.mxu1 %v3247_v1 }
 0xbee   : > { %4706 = vmatprep.subr.mxu0 %v3061_v2  ;;  %4746 = vmatprep.subr.mxu1 %v3246_v3 }
 0xbef   : > { %4707 = vmatpush3.msra.mxu0 %v3061_v2  ;;  %4747 = vmatpush3.msra.mxu1 %v3246_v3 }
 0xbf0   : > { %4708 = vmatprep.subr.mxu0 %v3060_v4  ;;  %4748 = vmatprep.subr.mxu1 %v3245_v5 }
 0xbf1   : > { %4709 = vmatpush3.msra.mxu0 %v3060_v4  ;;  %4749 = vmatpush3.msra.mxu1 %v3245_v5 }
 0xbf2   : > { %4710 = vmatprep.subr.mxu0 %v3059_v6  ;;  %4750 = vmatprep.subr.mxu1 %v3244_v7 }
 0xbf3   : > { %4711 = vmatpush3.msra.mxu0 %v3059_v6  ;;  %4751 = vmatpush3.msra.mxu1 %v3244_v7 }
 0xbf4   : > { %4712 = vmatprep.subr.mxu0 %v3058_v8  ;;  %4752 = vmatprep.subr.mxu1 %v3243_v9 }
 0xbf5   : > { %4713 = vmatpush3.msra.mxu0 %v3058_v8  ;;  %4753 = vmatpush3.msra.mxu1 %v3243_v9 }
 0xbf6   : > { %4714 = vmatprep.subr.mxu0 %v3057_v10  ;;  %4754 = vmatprep.subr.mxu1 %v3242_v11 }
 0xbf7   : > { %4715 = vmatpush3.msra.mxu0 %v3057_v10  ;;  %4755 = vmatpush3.msra.mxu1 %v3242_v11 }
 0xbf8   : > { %4716 = vmatprep.subr.mxu0 %v3056_v12  ;;  %4756 = vmatprep.subr.mxu1 %v3241_v13 }
 0xbf9   : > { %4717 = vmatpush3.msra.mxu0 %v3056_v12  ;;  %4757 = vmatpush3.msra.mxu1 %v3241_v13 }
 0xbfa   : > { %4718 = vmatprep.subr.mxu0 %v3055_v14  ;;  %4758 = vmatprep.subr.mxu1 %v3240_v15 }
 0xbfb   : > { %4719 = vmatpush3.msra.mxu0 %v3055_v14  ;;  %4759 = vmatpush3.msra.mxu1 %v3240_v15 }
 0xbfc   : > { %4720 = vmatprep.subr.mxu0 %v3054_v16  ;;  %4760 = vmatprep.subr.mxu1 %v3239_v17 }
 0xbfd   : > { %4721 = vmatpush3.msra.mxu0 %v3054_v16  ;;  %4761 = vmatpush3.msra.mxu1 %v3239_v17 }
 0xbfe   : > { %4722 = vmatprep.subr.mxu0 %v3053_v18  ;;  %4762 = vmatprep.subr.mxu1 %v3238_v19 }
 0xbff   : > { %4723 = vmatpush3.msra.mxu0 %v3053_v18  ;;  %4763 = vmatpush3.msra.mxu1 %v3238_v19 }
 0xc00   : > { %4724 = vmatprep.subr.mxu0 %v3052_v20  ;;  %4764 = vmatprep.subr.mxu1 %v3237_v21 }
 0xc01   : > { %4725 = vmatpush3.msra.mxu0 %v3052_v20  ;;  %4765 = vmatpush3.msra.mxu1 %v3237_v21 }
 0xc02   : > { %4726 = vmatprep.subr.mxu0 %v3051_v22  ;;  %4766 = vmatprep.subr.mxu1 %v3236_v23 }
 0xc03   : > { %4727 = vmatpush3.msra.mxu0 %v3051_v22  ;;  %4767 = vmatpush3.msra.mxu1 %v3236_v23 }
 0xc04   : > { %4728 = vmatprep.subr.mxu0 %v3050_v24  ;;  %4768 = vmatprep.subr.mxu1 %v3235_v26 }
 0xc05   : > { %4729 = vmatpush3.msra.mxu0 %v3050_v24  ;;  %4769 = vmatpush3.msra.mxu1 %v3235_v26 }
 0xc06   : > { %4730 = vmatprep.subr.mxu0 %v3049_v25  ;;  %4770 = vmatprep.subr.mxu1 %v3234_v27 }
 0xc07   : > { %4731 = vmatpush3.msra.mxu0 %v3049_v25  ;;  %4771 = vmatpush3.msra.mxu1 %v3234_v27 }
 0xc08   : > { %4777 = vmatprep.subr.mxu0 %v5191_v56  ;;  %4772 = vmatprep.subr.mxu1 %v3233_v28 }
 0xc09   : > { %4773 = vmatpush3.msra.mxu1 %v3233_v28 }
 0xca8   : > { %v4699_v29 = vpop.f32.mrf.mxu0 }
 0xca9   : > { %v4741_v30 = vpop.f32.mrf.mxu1 }
 0xcaa   : > { %v3039_v31 = vpop.f32.mrf.mxu0 }
 0xcab   : > { %4732 = vmatprep.mubr.f32.mxu0 %v3039_v31  ;;  %v3223_v32 = vpop.f32.mrf.mxu1 }
 0xcac   : > { %4733 = vmatmul.mubr.f32.vlgmr.msra.gmra.mxu0 %v4699_v29  ;;  %4774 = vmatprep.mubr.f32.mxu1 %v3223_v32 }
 0xcad   : > { %4778 = vmatpush3.msra.mxu0 %v5191_v56  ;;  %4775 = vmatmul.mubr.f32.vlgmr.msra.gmra.mxu1 %v4741_v30 }
 0xcae   : > { %4779 = vmatprep.subr.mxu0 %v5193_v58  ;;  %4781 = vmatprep.mubr.msk.f32.mxu0 %vm247_vm0, %v3327_v33 }
 0xcaf   : > { %4780 = vmatpush3.msra.mxu0 %v5193_v58 }
 0xcb0   : > { %4782 = vmatmul.mubr.msk.f32.vlgmr.msra.gmra.mxu0 %vm247_vm0, %v3328_v34  ;;  %4784 = vmatprep.subr.mxu0 %v3426_v35 }
 0xcb1   : > { %4785 = vmatpush3.msra.mxu0 %v3426_v35 }
 0xcb2   : > { %4786 = vmatprep.subr.mxu0 %v3425_v36 }
 0xcb3   : > { %4787 = vmatpush3.msra.mxu0 %v3425_v36 }
 0xcb4   : > { %4788 = vmatprep.subr.mxu0 %v3424_v37 }
 0xcb5   : > { %4789 = vmatpush3.msra.mxu0 %v3424_v37 }
 0xcb6   : > { %4790 = vmatprep.subr.mxu0 %v3423_v38 }
 0xcb7   : > { %4791 = vmatpush3.msra.mxu0 %v3423_v38 }
 0xcb8   : > { %4792 = vmatprep.subr.mxu0 %v3422_v39 }
 0xcb9   : > { %4793 = vmatpush3.msra.mxu0 %v3422_v39 }
 0xcba   : > { %4794 = vmatprep.subr.mxu0 %v3421_v40 }
 0xcbb   : > { %4795 = vmatpush3.msra.mxu0 %v3421_v40 }
 0xcbc   : > { %4796 = vmatprep.subr.mxu0 %v3420_v41 }
 0xcbd   : > { %4797 = vmatpush3.msra.mxu0 %v3420_v41 }
 0xcbe   : > { %4798 = vmatprep.subr.mxu0 %v3419_v42 }
 0xcbf   : > { %4799 = vmatpush3.msra.mxu0 %v3419_v42 }
 0xcc0   : > { %4800 = vmatprep.subr.mxu0 %v3418_v43 }
 0xcc1   : > { %4801 = vmatpush3.msra.mxu0 %v3418_v43 }
 0xcc2   : > { %4802 = vmatprep.subr.mxu0 %v3417_v44 }
 0xcc3   : > { %4803 = vmatpush3.msra.mxu0 %v3417_v44 }
 0xcc4   : > { %4804 = vmatprep.subr.mxu0 %v3416_v45 }
 0xcc5   : > { %4805 = vmatpush3.msra.mxu0 %v3416_v45 }
 0xcc6   : > { %4806 = vmatprep.subr.mxu0 %v3415_v46 }
 0xcc7   : > { %4807 = vmatpush3.msra.mxu0 %v3415_v46 }
 0xcc8   : > { %4808 = vmatprep.subr.mxu0 %v3414_v47 }
 0xcc9   : > { %4809 = vmatpush3.msra.mxu0 %v3414_v47 }
 0xcca   : > { %4810 = vmatprep.subr.mxu0 %v3413_v48 }
 0xccb   : > { %4811 = vmatpush3.msra.mxu0 %v3413_v48 }
 0xccc   : > { %4812 = vmatprep.subr.mxu0 %v3412_v49 }
 0xccd   : > { %4813 = vmatpush3.msra.mxu0 %v3412_v49 }
 0xcce   : > { %4814 = vmatprep.subr.mxu0 %v3411_v50 }
 0xccf   : > { %4815 = vmatpush3.msra.mxu0 %v3411_v50 }
 0xd6c   : > { %v4734_v51 = vpop.f32.mrf.mxu0 }
 0xd6d   : > { %v4776_v56 = vpop.f32.mrf.mxu1  ;;  %v3147_v57 = vadd.f32 %v4734_v51, %v3656_v55 }
 0xd6e   : > { %v3131_v52 = vpop.f32.mrf.mxu0 }
 0xd6f   : > { %v3146_v58 = vadd.f32 %v3656_v55, %v3131_v52  ;;  %v3315_v59 = vpop.f32.mrf.mxu1  ;;  %v3325_v60 = vadd.f32 %v4776_v56, %v3147_v57 }
 0xd70   : > { %v4783_v53 = vpop.f32.mrf.mxu0 }
 0xd71   : > { %v3324_v62 = vadd.f32 %v3315_v59, %v3146_v58 }
 0xd72   : > { %v3401_v54 = vpop.f32.mrf.mxu0 }
 0xd73   : > { %4816 = vmatprep.mubr.f32.mxu0 %v3401_v54 }
 0xd74   : > { %4817 = vmatmul.mubr.f32.vlgmr.msra.gmra.mxu0 %v4783_v53 }
 0xe34   : > { %v4818_v61 = vpop.f32.mrf.mxu0 }
 0xe35   : > { %v3503_v63 = vadd.f32 %v4818_v61, %v3325_v60 }
 0xe36   : > { %v3493_v0 = vpop.f32.mrf.mxu0 }
 0xe37   : > { %v3662_v1 = vmul.f32 -1.442695, %v3503_v63  ;;  %v3502_v2 = vadd.f32 %v3493_v0, %v3324_v62 }
 0xe39   : > { %4862 = vpow2.f32 %v3662_v1  ;;  %v3661_v3 = vmul.f32 -1.442695, %v3502_v2 }
 0xe3b   : > { %4864 = vpow2.f32 %v3661_v3 }
 0xe46   : > { %v4863_v4 = vpop.eup %4862 }
 0xe47   : > { %v3511_v5 = vadd.f32 1.0, %v4863_v4 }
 0xe48   : > { %v4865_v6 = vpop.eup %4864 }
 0xe49   : > { %4866 = vrcp.f32 %v3511_v5  ;;  %v3510_v7 = vadd.f32 1.0, %v4865_v6 }
 0xe4b   : > { %4868 = vrcp.f32 %v3510_v7 }
 0xe56   : > { %v4867_v8 = vpop.eup %4866 }
 0xe57   : > { %3517 = vst [vmem:[%s241_s20 + $0x8] sm:$0xff] %v4867_v8 }
 0xe58   : > { %v4869_v9 = vpop.eup %4868 }
 0xe59   : > { %3516 = vst [vmem:[%s241_s20] sm:$0xff] %v4869_v9 }
 0xe5a PF: > { %s16_s15 = sadd.s32 1, %s4962_s15  }
 0xe5b   : > { %p13_p2 = scmp.ge.s32.totalorder %s16_s15, 4  }
 0xe5d   :  { %15 = sbr.rel (!%p13_p2) target bundleno = 2 (0x2), region = 118 }
 0xe62   :  { %3539 = vsyncpa [#allocation3], 1 }
 0xe63   :  { %3541 = vsyncpa [#allocation3 + $0x1], 1 }
 0xe64   :  { %3542 = vsyncpa [#allocation5], 1 }

</bundles_post_ra>
